<compile_context>
chip_gen: v6e
topology: v6e:2x2x1
jax: 0.10.0
libtpu: 0.0.40
codegen_flags: <defaults>
</compile_context>

<pallas_src>
import functools

import jax
import jax.numpy as jnp
from jax import lax
from jax.experimental import pallas as pl
from jax.experimental.pallas import tpu as pltpu


# ----------------------------- in-kernel helpers -----------------------------

def _silu(x):
    return x * jax.nn.sigmoid(x)


def _group_norm(h, gamma, beta, gavg, gunpack, eps=1e-5):
    """GroupNorm on a (C, S) tile (biased variance, like torch).

    gavg:    (groups, C) constant, 1/(cg*S) on that group's channels.
    gunpack: (C, groups) constant 0/1, broadcasts group stats back to channels.
    """
    rs = jnp.sum(h, axis=1, keepdims=True)            # (C, 1) per-channel sums
    rs2 = jnp.sum(h * h, axis=1, keepdims=True)
    mu = jnp.dot(gunpack, jnp.dot(gavg, rs, preferred_element_type=jnp.float32),
                 preferred_element_type=jnp.float32)              # (C, 1)
    ex2 = jnp.dot(gunpack, jnp.dot(gavg, rs2, preferred_element_type=jnp.float32),
                  preferred_element_type=jnp.float32)             # (C, 1)
    var = ex2 - mu * mu
    return (h - mu) * lax.rsqrt(var + eps) * gamma + beta


def _shift_flat(x, off, S):
    """out[:, p] = x[:, p + off] if 0 <= p + off < S else 0, static `off`."""
    if off == 0:
        return x
    C = x.shape[0]
    z = jnp.zeros((C, abs(off)), x.dtype)
    if off > 0:
        return jnp.concatenate([x[:, off:], z], axis=1)
    return jnp.concatenate([z, x[:, :S + off]], axis=1)


def _conv3x3(h, w_ref, b_ref, col_masks, Wh, mxu_dtype):
    """3x3 same-padding conv on a (Cin, S) tile, S = Hh*Wh row-major on lanes.

    w_ref: (Cout, 9*Cin), column k*Cin + cin with tap k = (dy+1)*3 + (dx+1).
    Vertical (row) boundaries are handled by the zero padding of the flattened
    shift; horizontal boundaries by pre-masking the source column (dx = +-1).
    Only the real conv contraction (K = 9*Cin) runs on the MXU.
    """
    Cin, S = h.shape
    h_dx = {-1: h * col_masks[-1], 0: h, 1: h * col_masks[1]}
    cols = []
    for k in range(9):
        dy, dx = k // 3 - 1, k % 3 - 1
        cols.append(_shift_flat(h_dx[dx], dy * Wh + dx, S))
    w = w_ref[...]
    if Cin % 8 == 0:
        # im2col-in-VMEM: one big-K MXU matmul instead of 9 skinny ones.
        col = jnp.concatenate(cols, axis=0).astype(mxu_dtype)      # (9*Cin, S)
        out = jnp.dot(w, col, preferred_element_type=jnp.float32)  # (Cout, S)
    else:
        # fallback for sublane-unaligned channel counts: 9 per-tap matmuls
        out = jnp.zeros((w.shape[0], S), jnp.float32)
        for k in range(9):
            out = out + jnp.dot(w[:, k * Cin:(k + 1) * Cin],
                                cols[k].astype(mxu_dtype),
                                preferred_element_type=jnp.float32)
    return out + b_ref[...]


# --------------------------------- the kernel --------------------------------

def _down_kernel(x_ref, te_ref,
                 g1, be1, ga1, gu1, w1, bc1,
                 wt, bt,
                 g2, be2, ga2, gu2, w2, bc2,
                 wres, o_ref, *, Hh, Wh, mxu_dtype):
    S = Hh * Wh
    xp = x_ref[0]                                     # (Cin, S) pooled input, f32

    # Column masks for the dx = +-1 taps, built ONCE and shared by both convs.
    c = lax.broadcasted_iota(jnp.int32, (1, S), 1) % Wh
    col_masks = {1: (c != 0).astype(jnp.float32),         # source col 0 invalid for dx=+1
                 -1: (c != Wh - 1).astype(jnp.float32)}   # source col Wh-1 invalid for dx=-1

    # norm1 -> SiLU -> conv1
    h = _silu(_group_norm(xp, g1[...], be1[...], ga1[...], gu1[...]))
    h = _conv3x3(h, w1, bc1, col_masks, Wh, mxu_dtype)             # (Cout, S)

    # time embedding: SiLU -> Linear, added per channel
    t = _silu(te_ref[0])                                           # (Td, 1)
    h = h + jnp.dot(wt[...], t, preferred_element_type=jnp.float32) + bt[...]

    # norm2 -> SiLU -> (dropout = identity, p=0) -> conv2
    h = _silu(_group_norm(h, g2[...], be2[...], ga2[...], gu2[...]))
    h = _conv3x3(h, w2, bc2, col_masks, Wh, mxu_dtype)

    # residual 1x1 conv (no bias) on the pooled input
    res = jnp.dot(wres[...], xp.astype(mxu_dtype),
                  preferred_element_type=jnp.float32)
    o_ref[0] = (h + res).astype(o_ref.dtype)


# --------------------------------- wrapper ------------------------------------

def _group_matrices(C, groups, S):
    cg = C // groups
    ch_group = jnp.arange(C, dtype=jnp.int32) // cg
    gids = jnp.arange(groups, dtype=jnp.int32)
    gavg = (gids[:, None] == ch_group[None, :]).astype(jnp.float32) / float(cg * S)
    gunpack = (ch_group[:, None] == gids[None, :]).astype(jnp.float32)
    return gavg, gunpack


def down_forward(params, x, time_emb, *, mxu_dtype=jnp.bfloat16):
    """Down.forward. x: (N, Cin, H, W), time_emb: (N, Td) -> (N, Cout, H/2, W/2).

    mxu_dtype: dtype of the conv / residual matmul operands (accumulation is
    always f32).  bf16 is the fast path on v6e/v7x; f32 gives exact numerics.
    """
    N, Cin, H, W = x.shape
    assert H % 2 == 0 and W % 2 == 0
    Hh, Wh = H // 2, W // 2
    S = Hh * Wh
    Cout = params["conv1_w"].shape[0]
    Td = params["time_w"].shape[1]

    x = x.astype(jnp.float32)
    # 2x2 max-pool as a single fused XLA reduction: the kernel reads one
    # quarter-size (Cin, S) block per sample (one DMA) instead of 4 strided copies.
    # TODO(synk): fold the pool into the kernel via strided pl.ds lane loads.
    xp = jnp.max(x.reshape(N, Cin, Hh, 2, Wh, 2), axis=(3, 5)).reshape(N, Cin, S)
    te_col = time_emb.astype(jnp.float32).reshape(N, Td, 1)

    groups1 = 32 if Cin % 32 == 0 else 1
    groups2 = 32 if Cout % 32 == 0 else 1
    ga1, gu1 = _group_matrices(Cin, groups1, S)
    ga2, gu2 = _group_matrices(Cout, groups2, S)

    g1 = params["norm1_w"].reshape(Cin, 1).astype(jnp.float32)
    be1 = params["norm1_b"].reshape(Cin, 1).astype(jnp.float32)
    # conv weights, tap-major columns: (Cout, 9*Cin), column k*Cin + cin, k = kh*3 + kw
    w1 = jnp.transpose(params["conv1_w"], (0, 2, 3, 1)).reshape(Cout, 9 * Cin).astype(mxu_dtype)
    bc1 = params["conv1_b"].reshape(Cout, 1).astype(jnp.float32)
    wt = params["time_w"].astype(jnp.float32)                       # (Cout, Td)
    bt = params["time_b"].reshape(Cout, 1).astype(jnp.float32)
    g2 = params["norm2_w"].reshape(Cout, 1).astype(jnp.float32)
    be2 = params["norm2_b"].reshape(Cout, 1).astype(jnp.float32)
    w2 = jnp.transpose(params["conv2_w"], (0, 2, 3, 1)).reshape(Cout, 9 * Cout).astype(mxu_dtype)
    bc2 = params["conv2_b"].reshape(Cout, 1).astype(jnp.float32)
    wres = params["res_w"].reshape(Cout, Cin).astype(mxu_dtype)

    def full_spec(shape):
        nd = len(shape)
        return pl.BlockSpec(shape, lambda b, _nd=nd: (0,) * _nd)
    # TODO(synk): single-buffer these resident weight blocks (pl.Buffered(1) or a
    # one-shot manual DMA) to halve their VMEM footprint at production channel counts.
    # TODO(synk): for production resolutions, add a spatial grid axis (1-row halo)
    # and Cout tiling so lane tiles are >=512 and VMEM stays bounded on v7x.

    kernel = functools.partial(_down_kernel, Hh=Hh, Wh=Wh, mxu_dtype=mxu_dtype)

    out = pl.pallas_call(
        kernel,
        out_shape=jax.ShapeDtypeStruct((N, Cout, S), jnp.float32),
        grid=(N,),
        in_specs=[
            pl.BlockSpec((1, Cin, S), lambda b: (b, 0, 0)),
            pl.BlockSpec((1, Td, 1), lambda b: (b, 0, 0)),
            full_spec((Cin, 1)), full_spec((Cin, 1)),
            full_spec((groups1, Cin)), full_spec((Cin, groups1)),
            full_spec((Cout, 9 * Cin)), full_spec((Cout, 1)),
            full_spec((Cout, Td)), full_spec((Cout, 1)),
            full_spec((Cout, 1)), full_spec((Cout, 1)),
            full_spec((groups2, Cout)), full_spec((Cout, groups2)),
            full_spec((Cout, 9 * Cout)), full_spec((Cout, 1)),
            full_spec((Cout, Cin)),
        ],
        out_specs=pl.BlockSpec((1, Cout, S), lambda b: (b, 0, 0)),
        compiler_params=pltpu.CompilerParams(
            dimension_semantics=("parallel",),        # batch shards across v7x's 2 TCs
            vmem_limit_bytes=32 * 1024 * 1024),
    )(xp, te_col, g1, be1, ga1, gu1, w1, bc1, wt, bt,
      g2, be2, ga2, gu2, w2, bc2, wres)

    return out.reshape(N, Cout, Hh, Wh)


# ----------------------- pure-JAX reference (for checking) --------------------

def _group_norm_ref(x, gamma, beta, groups, eps=1e-5):
    N, C, H, W = x.shape
    xg = x.reshape(N, groups, C // groups, H, W)
    mu = jnp.mean(xg, axis=(2, 3, 4), keepdims=True)
    var = jnp.mean((xg - mu) ** 2, axis=(2, 3, 4), keepdims=True)
    xn = ((xg - mu) / jnp.sqrt(var + eps)).reshape(N, C, H, W)
    return xn * gamma[None, :, None, None] + beta[None, :, None, None]


def down_reference(params, x, time_emb):
    N, Cin, H, W = x.shape
    groups1 = 32 if Cin % 32 == 0 else 1
    groups2 = 32 if params["conv1_w"].shape[0] % 32 == 0 else 1
    dn = ("NCHW", "OIHW", "NCHW")
    hp = lax.Precision.HIGHEST
    xp = jnp.max(x.reshape(N, Cin, H // 2, 2, W // 2, 2), axis=(3, 5))
    h = jax.nn.silu(_group_norm_ref(xp, params["norm1_w"], params["norm1_b"], groups1))
    h = lax.conv_general_dilated(h, params["conv1_w"], (1, 1), "SAME",
                                 dimension_numbers=dn, precision=hp)
    h = h + params["conv1_b"][None, :, None, None]
    tc = jnp.dot(jax.nn.silu(time_emb), params["time_w"].T, precision=hp) + params["time_b"]
    h = h + tc[:, :, None, None]
    h = jax.nn.silu(_group_norm_ref(h, params["norm2_w"], params["norm2_b"], groups2))
    h = lax.conv_general_dilated(h, params["conv2_w"], (1, 1), "SAME",
                                 dimension_numbers=dn, precision=hp)
    h = h + params["conv2_b"][None, :, None, None]
    res = lax.conv_general_dilated(xp, params["res_w"], (1, 1), "SAME",
                                   dimension_numbers=dn, precision=hp)
    return h + res


# ----------------------------------- main --------------------------------------

if __name__ == "__main__":
    # Small but representative: exercises groups=32 (cg=1 and cg=2) and the
    # single-matmul im2col path (channels are multiples of 8).
    N, Cin, Cout, H, W, Td = 2, 32, 64, 16, 16, 32

    key = jax.random.PRNGKey(0)
    ks = jax.random.split(key, 13)
    params = {
        "norm1_w": 1.0 + 0.1 * jax.random.normal(ks[0], (Cin,), jnp.float32),
        "norm1_b": 0.1 * jax.random.normal(ks[1], (Cin,), jnp.float32),
        "conv1_w": 0.1 * jax.random.normal(ks[2], (Cout, Cin, 3, 3), jnp.float32),
        "conv1_b": 0.1 * jax.random.normal(ks[3], (Cout,), jnp.float32),
        "time_w": 0.1 * jax.random.normal(ks[4], (Cout, Td), jnp.float32),
        "time_b": 0.1 * jax.random.normal(ks[5], (Cout,), jnp.float32),
        "norm2_w": 1.0 + 0.1 * jax.random.normal(ks[6], (Cout,), jnp.float32),
        "norm2_b": 0.1 * jax.random.normal(ks[7], (Cout,), jnp.float32),
        "conv2_w": 0.1 * jax.random.normal(ks[8], (Cout, Cout, 3, 3), jnp.float32),
        "conv2_b": 0.1 * jax.random.normal(ks[9], (Cout,), jnp.float32),
        "res_w": 0.1 * jax.random.normal(ks[10], (Cout, Cin, 1, 1), jnp.float32),
    }
    x = jax.random.normal(ks[11], (N, Cin, H, W), jnp.float32)
    t = jax.random.normal(ks[12], (N, Td), jnp.float32)

    y_ref = down_reference(params, x, t)
    jax.block_until_ready(y_ref)

    # bf16 MXU operands with f32 accumulation (v6e/v7x throughput path).  The only
    # divergence from the full-f32 reference is bf16 rounding in the conv/residual
    # matmuls (typically ~0.5-1% of the output range); with mxu_dtype=jnp.float32
    # the kernel matches the reference to ~1e-5.
    y = down_forward(params, x, t, mxu_dtype=jnp.bfloat16)
    jax.block_until_ready(y)
    assert y.shape == (N, Cout, H // 2, W // 2), y.shape

    rel_err = float(jnp.max(jnp.abs(y - y_ref)) / jnp.max(jnp.abs(y_ref)))
    assert rel_err < 4e-2, f"relative error vs reference too large: {rel_err}"

    print("KERNEL_OK")
</pallas_src>

<mosaic_0001>
module attributes {stable_mosaic.version = 11 : i64} {
  func.func @_down_kernel(%arg0: i32, %arg1: memref<1x32x64xf32, #tpu.memory_space<vmem>>, %arg2: memref<1x32x1xf32, #tpu.memory_space<vmem>>, %arg3: memref<32x1xf32, #tpu.memory_space<vmem>>, %arg4: memref<32x1xf32, #tpu.memory_space<vmem>>, %arg5: memref<32x32xf32, #tpu.memory_space<vmem>>, %arg6: memref<32x32xf32, #tpu.memory_space<vmem>>, %arg7: memref<64x288xbf16, #tpu.memory_space<vmem>>, %arg8: memref<64x1xf32, #tpu.memory_space<vmem>>, %arg9: memref<64x32xf32, #tpu.memory_space<vmem>>, %arg10: memref<64x1xf32, #tpu.memory_space<vmem>>, %arg11: memref<64x1xf32, #tpu.memory_space<vmem>>, %arg12: memref<64x1xf32, #tpu.memory_space<vmem>>, %arg13: memref<32x64xf32, #tpu.memory_space<vmem>>, %arg14: memref<64x32xf32, #tpu.memory_space<vmem>>, %arg15: memref<64x576xbf16, #tpu.memory_space<vmem>>, %arg16: memref<64x1xf32, #tpu.memory_space<vmem>>, %arg17: memref<64x32xbf16, #tpu.memory_space<vmem>>, %arg18: memref<1x64x64xf32, #tpu.memory_space<vmem>>) attributes {dimension_semantics = [#tpu.dimension_semantics<parallel>], iteration_bounds = array<i64: 2>, scalar_prefetch = 0 : i64, scratch_operands = 0 : i64, tpu.core_type = #tpu.core_type<tc>, window_params = [{transform_indices = @transform_0, window_bounds = array<i64: 1, 32, 64>}, {transform_indices = @transform_1, window_bounds = array<i64: 1, 32, 1>}, {pipeline_mode = #tpu.pipeline_mode<synchronous>, transform_indices = @transform_2, window_bounds = array<i64: 32, 1>}, {pipeline_mode = #tpu.pipeline_mode<synchronous>, transform_indices = @transform_3, window_bounds = array<i64: 32, 1>}, {pipeline_mode = #tpu.pipeline_mode<synchronous>, transform_indices = @transform_4, window_bounds = array<i64: 32, 32>}, {pipeline_mode = #tpu.pipeline_mode<synchronous>, transform_indices = @transform_5, window_bounds = array<i64: 32, 32>}, {pipeline_mode = #tpu.pipeline_mode<synchronous>, transform_indices = @transform_6, window_bounds = array<i64: 64, 288>}, {pipeline_mode = #tpu.pipeline_mode<synchronous>, transform_indices = @transform_7, window_bounds = array<i64: 64, 1>}, {pipeline_mode = #tpu.pipeline_mode<synchronous>, transform_indices = @transform_8, window_bounds = array<i64: 64, 32>}, {pipeline_mode = #tpu.pipeline_mode<synchronous>, transform_indices = @transform_9, window_bounds = array<i64: 64, 1>}, {pipeline_mode = #tpu.pipeline_mode<synchronous>, transform_indices = @transform_10, window_bounds = array<i64: 64, 1>}, {pipeline_mode = #tpu.pipeline_mode<synchronous>, transform_indices = @transform_11, window_bounds = array<i64: 64, 1>}, {pipeline_mode = #tpu.pipeline_mode<synchronous>, transform_indices = @transform_12, window_bounds = array<i64: 32, 64>}, {pipeline_mode = #tpu.pipeline_mode<synchronous>, transform_indices = @transform_13, window_bounds = array<i64: 64, 32>}, {pipeline_mode = #tpu.pipeline_mode<synchronous>, transform_indices = @transform_14, window_bounds = array<i64: 64, 576>}, {pipeline_mode = #tpu.pipeline_mode<synchronous>, transform_indices = @transform_15, window_bounds = array<i64: 64, 1>}, {pipeline_mode = #tpu.pipeline_mode<synchronous>, transform_indices = @transform_16, window_bounds = array<i64: 64, 32>}, {transform_indices = @transform_17, window_bounds = array<i64: 1, 64, 64>}]} {
    %c0 = arith.constant 0 : index
    %c0_0 = arith.constant 0 : index
    %c0_1 = arith.constant 0 : index
    %0 = vector.load %arg1[%c0, %c0_0, %c0_1] : memref<1x32x64xf32, #tpu.memory_space<vmem>>, vector<1x32x64xf32>
    %1 = vector.shape_cast %0 : vector<1x32x64xf32> to vector<32x64xf32>
    %2 = tpu.iota {dimensions = array<i32: 1>} : vector<1x64xi32>
    %c8_i32 = arith.constant 8 : i32
    %c0_i32 = arith.constant 0 : i32
    %3 = arith.cmpi eq, %c8_i32, %c0_i32 : i32
    %c1_i32 = arith.constant 1 : i32
    %4 = arith.select %3, %c1_i32, %c8_i32 : i32
    %5 = vector.broadcast %4 : i32 to vector<1x64xi32>
    %6 = arith.remsi %2, %5 : vector<1x64xi32>
    %c0_i32_2 = arith.constant 0 : i32
    %7 = vector.broadcast %c0_i32_2 : i32 to vector<1x64xi32>
    %8 = arith.cmpi ne, %6, %7 : vector<1x64xi32>
    %c0_i32_3 = arith.constant 0 : i32
    %9 = vector.broadcast %c0_i32_3 : i32 to vector<1x64xi32>
    %10 = arith.cmpi slt, %6, %9 : vector<1x64xi32>
    %c0_i32_4 = arith.constant 0 : i32
    %11 = arith.cmpi slt, %4, %c0_i32_4 : i32
    %12 = vector.broadcast %11 : i1 to vector<1x64xi1>
    %13 = vector.broadcast %12 : vector<1x64xi1> to vector<1x64xi1>
    %14 = arith.xori %10, %13 : vector<1x64xi1>
    %15 = arith.andi %14, %8 : vector<1x64xi1>
    %16 = vector.broadcast %4 : i32 to vector<1x64xi32>
    %17 = arith.addi %6, %16 : vector<1x64xi32>
    %18 = arith.select %15, %17, %6 : vector<1x64xi1>, vector<1x64xi32>
    %c0_i32_5 = arith.constant 0 : i32
    %19 = vector.broadcast %c0_i32_5 : i32 to vector<1x64xi32>
    %20 = arith.cmpi ne, %18, %19 : vector<1x64xi32>
    %21 = arith.extui %20 : vector<1x64xi1> to vector<1x64xi32>
    %22 = arith.sitofp %21 : vector<1x64xi32> to vector<1x64xf32>
    %c7_i32 = arith.constant 7 : i32
    %23 = vector.broadcast %c7_i32 : i32 to vector<1x64xi32>
    %24 = arith.cmpi ne, %18, %23 : vector<1x64xi32>
    %25 = arith.extui %24 : vector<1x64xi1> to vector<1x64xi32>
    %26 = arith.sitofp %25 : vector<1x64xi32> to vector<1x64xf32>
    %c0_6 = arith.constant 0 : index
    %c0_7 = arith.constant 0 : index
    %27 = vector.load %arg3[%c0_6, %c0_7] : memref<32x1xf32, #tpu.memory_space<vmem>>, vector<32x1xf32>
    %c0_8 = arith.constant 0 : index
    %c0_9 = arith.constant 0 : index
    %28 = vector.load %arg4[%c0_8, %c0_9] : memref<32x1xf32, #tpu.memory_space<vmem>>, vector<32x1xf32>
    %c0_10 = arith.constant 0 : index
    %c0_11 = arith.constant 0 : index
    %29 = vector.load %arg5[%c0_10, %c0_11] : memref<32x32xf32, #tpu.memory_space<vmem>>, vector<32x32xf32>
    %c0_12 = arith.constant 0 : index
    %c0_13 = arith.constant 0 : index
    %30 = vector.load %arg6[%c0_12, %c0_13] : memref<32x32xf32, #tpu.memory_space<vmem>>, vector<32x32xf32>
    %cst = arith.constant dense<0.000000e+00> : vector<32xf32>
    %31 = vector.multi_reduction <add>, %1, %cst [1] : vector<32x64xf32> to vector<32xf32>
    %32 = vector.shape_cast %31 : vector<32xf32> to vector<32x1xf32>
    %33 = arith.mulf %1, %1 : vector<32x64xf32>
    %cst_14 = arith.constant dense<0.000000e+00> : vector<32xf32>
    %34 = vector.multi_reduction <add>, %33, %cst_14 [1] : vector<32x64xf32> to vector<32xf32>
    %35 = vector.shape_cast %34 : vector<32xf32> to vector<32x1xf32>
    %cst_15 = arith.constant dense<0.000000e+00> : vector<32x1xf32>
    %36 = tpu.matmul %29, %32, %cst_15 {dimension_numbers = #tpu.dot_dimension_numbers<[1], [0], [0], [1], [0, 0, 1, 1], [], []>} : vector<32x32xf32>, vector<32x1xf32>, vector<32x1xf32> -> vector<32x1xf32>
    %cst_16 = arith.constant dense<0.000000e+00> : vector<32x1xf32>
    %37 = tpu.matmul %30, %36, %cst_16 {dimension_numbers = #tpu.dot_dimension_numbers<[1], [0], [0], [1], [0, 0, 1, 1], [], []>} : vector<32x32xf32>, vector<32x1xf32>, vector<32x1xf32> -> vector<32x1xf32>
    %cst_17 = arith.constant dense<0.000000e+00> : vector<32x1xf32>
    %38 = tpu.matmul %29, %35, %cst_17 {dimension_numbers = #tpu.dot_dimension_numbers<[1], [0], [0], [1], [0, 0, 1, 1], [], []>} : vector<32x32xf32>, vector<32x1xf32>, vector<32x1xf32> -> vector<32x1xf32>
    %cst_18 = arith.constant dense<0.000000e+00> : vector<32x1xf32>
    %39 = tpu.matmul %30, %38, %cst_18 {dimension_numbers = #tpu.dot_dimension_numbers<[1], [0], [0], [1], [0, 0, 1, 1], [], []>} : vector<32x32xf32>, vector<32x1xf32>, vector<32x1xf32> -> vector<32x1xf32>
    %40 = arith.mulf %37, %37 : vector<32x1xf32>
    %41 = arith.subf %39, %40 : vector<32x1xf32>
    %42 = vector.broadcast %37 : vector<32x1xf32> to vector<32x64xf32>
    %43 = arith.subf %1, %42 : vector<32x64xf32>
    %cst_19 = arith.constant 9.99999974E-6 : f32
    %44 = vector.broadcast %cst_19 : f32 to vector<32x1xf32>
    %45 = arith.addf %41, %44 : vector<32x1xf32>
    %46 = math.rsqrt %45 : vector<32x1xf32>
    %47 = vector.broadcast %46 : vector<32x1xf32> to vector<32x64xf32>
    %48 = arith.mulf %43, %47 : vector<32x64xf32>
    %49 = vector.broadcast %27 : vector<32x1xf32> to vector<32x64xf32>
    %50 = arith.mulf %48, %49 : vector<32x64xf32>
    %51 = vector.broadcast %28 : vector<32x1xf32> to vector<32x64xf32>
    %52 = arith.addf %50, %51 : vector<32x64xf32>
    %53 = arith.negf %52 : vector<32x64xf32>
    %54 = math.exp %53 : vector<32x64xf32>
    %cst_20 = arith.constant 1.000000e+00 : f32
    %55 = vector.broadcast %cst_20 : f32 to vector<32x64xf32>
    %56 = arith.addf %55, %54 : vector<32x64xf32>
    %57 = arith.divf %55, %56 : vector<32x64xf32>
    %58 = arith.mulf %52, %57 : vector<32x64xf32>
    %59 = vector.broadcast %26 : vector<1x64xf32> to vector<32x64xf32>
    %60 = arith.mulf %58, %59 : vector<32x64xf32>
    %61 = vector.broadcast %22 : vector<1x64xf32> to vector<32x64xf32>
    %62 = arith.mulf %58, %61 : vector<32x64xf32>
    %cst_21 = arith.constant 0.000000e+00 : f32
    %63 = vector.broadcast %cst_21 : f32 to vector<32x9xf32>
    %64 = vector.extract_strided_slice %60 {offsets = [0, 0], sizes = [32, 55], strides = [1, 1]} : vector<32x64xf32> to vector<32x55xf32>
    %65 = tpu.concatenate %63, %64 in 1 : vector<32x9xf32>, vector<32x55xf32> -> vector<32x64xf32>
    %cst_22 = arith.constant 0.000000e+00 : f32
    %66 = vector.broadcast %cst_22 : f32 to vector<32x8xf32>
    %67 = vector.extract_strided_slice %58 {offsets = [0, 0], sizes = [32, 56], strides = [1, 1]} : vector<32x64xf32> to vector<32x56xf32>
    %68 = tpu.concatenate %66, %67 in 1 : vector<32x8xf32>, vector<32x56xf32> -> vector<32x64xf32>
    %cst_23 = arith.constant 0.000000e+00 : f32
    %69 = vector.broadcast %cst_23 : f32 to vector<32x7xf32>
    %70 = vector.extract_strided_slice %62 {offsets = [0, 0], sizes = [32, 57], strides = [1, 1]} : vector<32x64xf32> to vector<32x57xf32>
    %71 = tpu.concatenate %69, %70 in 1 : vector<32x7xf32>, vector<32x57xf32> -> vector<32x64xf32>
    %cst_24 = arith.constant 0.000000e+00 : f32
    %72 = vector.broadcast %cst_24 : f32 to vector<32x1xf32>
    %73 = vector.extract_strided_slice %60 {offsets = [0, 0], sizes = [32, 63], strides = [1, 1]} : vector<32x64xf32> to vector<32x63xf32>
    %74 = tpu.concatenate %72, %73 in 1 : vector<32x1xf32>, vector<32x63xf32> -> vector<32x64xf32>
    %cst_25 = arith.constant 0.000000e+00 : f32
    %75 = vector.broadcast %cst_25 : f32 to vector<32x1xf32>
    %76 = vector.extract_strided_slice %62 {offsets = [0, 1], sizes = [32, 63], strides = [1, 1]} : vector<32x64xf32> to vector<32x63xf32>
    %77 = tpu.concatenate %76, %75 in 1 : vector<32x63xf32>, vector<32x1xf32> -> vector<32x64xf32>
    %cst_26 = arith.constant 0.000000e+00 : f32
    %78 = vector.broadcast %cst_26 : f32 to vector<32x7xf32>
    %79 = vector.extract_strided_slice %60 {offsets = [0, 7], sizes = [32, 57], strides = [1, 1]} : vector<32x64xf32> to vector<32x57xf32>
    %80 = tpu.concatenate %79, %78 in 1 : vector<32x57xf32>, vector<32x7xf32> -> vector<32x64xf32>
    %cst_27 = arith.constant 0.000000e+00 : f32
    %81 = vector.broadcast %cst_27 : f32 to vector<32x8xf32>
    %82 = vector.extract_strided_slice %58 {offsets = [0, 8], sizes = [32, 56], strides = [1, 1]} : vector<32x64xf32> to vector<32x56xf32>
    %83 = tpu.concatenate %82, %81 in 1 : vector<32x56xf32>, vector<32x8xf32> -> vector<32x64xf32>
    %cst_28 = arith.constant 0.000000e+00 : f32
    %84 = vector.broadcast %cst_28 : f32 to vector<32x9xf32>
    %85 = vector.extract_strided_slice %62 {offsets = [0, 9], sizes = [32, 55], strides = [1, 1]} : vector<32x64xf32> to vector<32x55xf32>
    %86 = tpu.concatenate %85, %84 in 1 : vector<32x55xf32>, vector<32x9xf32> -> vector<32x64xf32>
    %c0_29 = arith.constant 0 : index
    %c0_30 = arith.constant 0 : index
    %87 = vector.load %arg7[%c0_29, %c0_30] : memref<64x288xbf16, #tpu.memory_space<vmem>>, vector<64x288xbf16>
    %88 = tpu.concatenate %65, %68, %71, %74, %58, %77, %80, %83, %86 in 0 : vector<32x64xf32>, vector<32x64xf32>, vector<32x64xf32>, vector<32x64xf32>, vector<32x64xf32>, vector<32x64xf32>, vector<32x64xf32>, vector<32x64xf32>, vector<32x64xf32> -> vector<288x64xf32>
    %89 = arith.truncf %88 : vector<288x64xf32> to vector<288x64xbf16>
    %cst_31 = arith.constant dense<0.000000e+00> : vector<64x64xf32>
    %90 = tpu.matmul %87, %89, %cst_31 {dimension_numbers = #tpu.dot_dimension_numbers<[1], [0], [0], [1], [0, 0, 1, 1], [], []>} : vector<64x288xbf16>, vector<288x64xbf16>, vector<64x64xf32> -> vector<64x64xf32>
    %c0_32 = arith.constant 0 : index
    %c0_33 = arith.constant 0 : index
    %91 = vector.load %arg8[%c0_32, %c0_33] : memref<64x1xf32, #tpu.memory_space<vmem>>, vector<64x1xf32>
    %92 = vector.broadcast %91 : vector<64x1xf32> to vector<64x64xf32>
    %93 = arith.addf %90, %92 : vector<64x64xf32>
    %c0_34 = arith.constant 0 : index
    %c0_35 = arith.constant 0 : index
    %c0_36 = arith.constant 0 : index
    %94 = vector.load %arg2[%c0_34, %c0_35, %c0_36] : memref<1x32x1xf32, #tpu.memory_space<vmem>>, vector<1x32x1xf32>
    %95 = vector.shape_cast %94 : vector<1x32x1xf32> to vector<32x1xf32>
    %96 = arith.negf %95 : vector<32x1xf32>
    %97 = math.exp %96 : vector<32x1xf32>
    %cst_37 = arith.constant 1.000000e+00 : f32
    %98 = vector.broadcast %cst_37 : f32 to vector<32x1xf32>
    %99 = arith.addf %98, %97 : vector<32x1xf32>
    %100 = arith.divf %98, %99 : vector<32x1xf32>
    %101 = arith.mulf %95, %100 : vector<32x1xf32>
    %c0_38 = arith.constant 0 : index
    %c0_39 = arith.constant 0 : index
    %102 = vector.load %arg9[%c0_38, %c0_39] : memref<64x32xf32, #tpu.memory_space<vmem>>, vector<64x32xf32>
    %cst_40 = arith.constant dense<0.000000e+00> : vector<64x1xf32>
    %103 = tpu.matmul %102, %101, %cst_40 {dimension_numbers = #tpu.dot_dimension_numbers<[1], [0], [0], [1], [0, 0, 1, 1], [], []>} : vector<64x32xf32>, vector<32x1xf32>, vector<64x1xf32> -> vector<64x1xf32>
    %104 = vector.broadcast %103 : vector<64x1xf32> to vector<64x64xf32>
    %105 = arith.addf %93, %104 : vector<64x64xf32>
    %c0_41 = arith.constant 0 : index
    %c0_42 = arith.constant 0 : index
    %106 = vector.load %arg10[%c0_41, %c0_42] : memref<64x1xf32, #tpu.memory_space<vmem>>, vector<64x1xf32>
    %107 = vector.broadcast %106 : vector<64x1xf32> to vector<64x64xf32>
    %108 = arith.addf %105, %107 : vector<64x64xf32>
    %c0_43 = arith.constant 0 : index
    %c0_44 = arith.constant 0 : index
    %109 = vector.load %arg11[%c0_43, %c0_44] : memref<64x1xf32, #tpu.memory_space<vmem>>, vector<64x1xf32>
    %c0_45 = arith.constant 0 : index
    %c0_46 = arith.constant 0 : index
    %110 = vector.load %arg12[%c0_45, %c0_46] : memref<64x1xf32, #tpu.memory_space<vmem>>, vector<64x1xf32>
    %c0_47 = arith.constant 0 : index
    %c0_48 = arith.constant 0 : index
    %111 = vector.load %arg13[%c0_47, %c0_48] : memref<32x64xf32, #tpu.memory_space<vmem>>, vector<32x64xf32>
    %c0_49 = arith.constant 0 : index
    %c0_50 = arith.constant 0 : index
    %112 = vector.load %arg14[%c0_49, %c0_50] : memref<64x32xf32, #tpu.memory_space<vmem>>, vector<64x32xf32>
    %cst_51 = arith.constant dense<0.000000e+00> : vector<64xf32>
    %113 = vector.multi_reduction <add>, %108, %cst_51 [1] : vector<64x64xf32> to vector<64xf32>
    %114 = vector.shape_cast %113 : vector<64xf32> to vector<64x1xf32>
    %115 = arith.mulf %108, %108 : vector<64x64xf32>
    %cst_52 = arith.constant dense<0.000000e+00> : vector<64xf32>
    %116 = vector.multi_reduction <add>, %115, %cst_52 [1] : vector<64x64xf32> to vector<64xf32>
    %117 = vector.shape_cast %116 : vector<64xf32> to vector<64x1xf32>
    %cst_53 = arith.constant dense<0.000000e+00> : vector<32x1xf32>
    %118 = tpu.matmul %111, %114, %cst_53 {dimension_numbers = #tpu.dot_dimension_numbers<[1], [0], [0], [1], [0, 0, 1, 1], [], []>} : vector<32x64xf32>, vector<64x1xf32>, vector<32x1xf32> -> vector<32x1xf32>
    %cst_54 = arith.constant dense<0.000000e+00> : vector<64x1xf32>
    %119 = tpu.matmul %112, %118, %cst_54 {dimension_numbers = #tpu.dot_dimension_numbers<[1], [0], [0], [1], [0, 0, 1, 1], [], []>} : vector<64x32xf32>, vector<32x1xf32>, vector<64x1xf32> -> vector<64x1xf32>
    %cst_55 = arith.constant dense<0.000000e+00> : vector<32x1xf32>
    %120 = tpu.matmul %111, %117, %cst_55 {dimension_numbers = #tpu.dot_dimension_numbers<[1], [0], [0], [1], [0, 0, 1, 1], [], []>} : vector<32x64xf32>, vector<64x1xf32>, vector<32x1xf32> -> vector<32x1xf32>
    %cst_56 = arith.constant dense<0.000000e+00> : vector<64x1xf32>
    %121 = tpu.matmul %112, %120, %cst_56 {dimension_numbers = #tpu.dot_dimension_numbers<[1], [0], [0], [1], [0, 0, 1, 1], [], []>} : vector<64x32xf32>, vector<32x1xf32>, vector<64x1xf32> -> vector<64x1xf32>
    %122 = arith.mulf %119, %119 : vector<64x1xf32>
    %123 = arith.subf %121, %122 : vector<64x1xf32>
    %124 = vector.broadcast %119 : vector<64x1xf32> to vector<64x64xf32>
    %125 = arith.subf %108, %124 : vector<64x64xf32>
    %cst_57 = arith.constant 9.99999974E-6 : f32
    %126 = vector.broadcast %cst_57 : f32 to vector<64x1xf32>
    %127 = arith.addf %123, %126 : vector<64x1xf32>
    %128 = math.rsqrt %127 : vector<64x1xf32>
    %129 = vector.broadcast %128 : vector<64x1xf32> to vector<64x64xf32>
    %130 = arith.mulf %125, %129 : vector<64x64xf32>
    %131 = vector.broadcast %109 : vector<64x1xf32> to vector<64x64xf32>
    %132 = arith.mulf %130, %131 : vector<64x64xf32>
    %133 = vector.broadcast %110 : vector<64x1xf32> to vector<64x64xf32>
    %134 = arith.addf %132, %133 : vector<64x64xf32>
    %135 = arith.negf %134 : vector<64x64xf32>
    %136 = math.exp %135 : vector<64x64xf32>
    %cst_58 = arith.constant 1.000000e+00 : f32
    %137 = vector.broadcast %cst_58 : f32 to vector<64x64xf32>
    %138 = arith.addf %137, %136 : vector<64x64xf32>
    %139 = arith.divf %137, %138 : vector<64x64xf32>
    %140 = arith.mulf %134, %139 : vector<64x64xf32>
    %141 = vector.broadcast %26 : vector<1x64xf32> to vector<64x64xf32>
    %142 = arith.mulf %140, %141 : vector<64x64xf32>
    %143 = vector.broadcast %22 : vector<1x64xf32> to vector<64x64xf32>
    %144 = arith.mulf %140, %143 : vector<64x64xf32>
    %cst_59 = arith.constant 0.000000e+00 : f32
    %145 = vector.broadcast %cst_59 : f32 to vector<64x9xf32>
    %146 = vector.extract_strided_slice %142 {offsets = [0, 0], sizes = [64, 55], strides = [1, 1]} : vector<64x64xf32> to vector<64x55xf32>
    %147 = tpu.concatenate %145, %146 in 1 : vector<64x9xf32>, vector<64x55xf32> -> vector<64x64xf32>
    %cst_60 = arith.constant 0.000000e+00 : f32
    %148 = vector.broadcast %cst_60 : f32 to vector<64x8xf32>
    %149 = vector.extract_strided_slice %140 {offsets = [0, 0], sizes = [64, 56], strides = [1, 1]} : vector<64x64xf32> to vector<64x56xf32>
    %150 = tpu.concatenate %148, %149 in 1 : vector<64x8xf32>, vector<64x56xf32> -> vector<64x64xf32>
    %cst_61 = arith.constant 0.000000e+00 : f32
    %151 = vector.broadcast %cst_61 : f32 to vector<64x7xf32>
    %152 = vector.extract_strided_slice %144 {offsets = [0, 0], sizes = [64, 57], strides = [1, 1]} : vector<64x64xf32> to vector<64x57xf32>
    %153 = tpu.concatenate %151, %152 in 1 : vector<64x7xf32>, vector<64x57xf32> -> vector<64x64xf32>
    %cst_62 = arith.constant 0.000000e+00 : f32
    %154 = vector.broadcast %cst_62 : f32 to vector<64x1xf32>
    %155 = vector.extract_strided_slice %142 {offsets = [0, 0], sizes = [64, 63], strides = [1, 1]} : vector<64x64xf32> to vector<64x63xf32>
    %156 = tpu.concatenate %154, %155 in 1 : vector<64x1xf32>, vector<64x63xf32> -> vector<64x64xf32>
    %cst_63 = arith.constant 0.000000e+00 : f32
    %157 = vector.broadcast %cst_63 : f32 to vector<64x1xf32>
    %158 = vector.extract_strided_slice %144 {offsets = [0, 1], sizes = [64, 63], strides = [1, 1]} : vector<64x64xf32> to vector<64x63xf32>
    %159 = tpu.concatenate %158, %157 in 1 : vector<64x63xf32>, vector<64x1xf32> -> vector<64x64xf32>
    %cst_64 = arith.constant 0.000000e+00 : f32
    %160 = vector.broadcast %cst_64 : f32 to vector<64x7xf32>
    %161 = vector.extract_strided_slice %142 {offsets = [0, 7], sizes = [64, 57], strides = [1, 1]} : vector<64x64xf32> to vector<64x57xf32>
    %162 = tpu.concatenate %161, %160 in 1 : vector<64x57xf32>, vector<64x7xf32> -> vector<64x64xf32>
    %cst_65 = arith.constant 0.000000e+00 : f32
    %163 = vector.broadcast %cst_65 : f32 to vector<64x8xf32>
    %164 = vector.extract_strided_slice %140 {offsets = [0, 8], sizes = [64, 56], strides = [1, 1]} : vector<64x64xf32> to vector<64x56xf32>
    %165 = tpu.concatenate %164, %163 in 1 : vector<64x56xf32>, vector<64x8xf32> -> vector<64x64xf32>
    %cst_66 = arith.constant 0.000000e+00 : f32
    %166 = vector.broadcast %cst_66 : f32 to vector<64x9xf32>
    %167 = vector.extract_strided_slice %144 {offsets = [0, 9], sizes = [64, 55], strides = [1, 1]} : vector<64x64xf32> to vector<64x55xf32>
    %168 = tpu.concatenate %167, %166 in 1 : vector<64x55xf32>, vector<64x9xf32> -> vector<64x64xf32>
    %c0_67 = arith.constant 0 : index
    %c0_68 = arith.constant 0 : index
    %169 = vector.load %arg15[%c0_67, %c0_68] : memref<64x576xbf16, #tpu.memory_space<vmem>>, vector<64x576xbf16>
    %170 = tpu.concatenate %147, %150, %153, %156, %140, %159, %162, %165, %168 in 0 : vector<64x64xf32>, vector<64x64xf32>, vector<64x64xf32>, vector<64x64xf32>, vector<64x64xf32>, vector<64x64xf32>, vector<64x64xf32>, vector<64x64xf32>, vector<64x64xf32> -> vector<576x64xf32>
    %171 = arith.truncf %170 : vector<576x64xf32> to vector<576x64xbf16>
    %cst_69 = arith.constant dense<0.000000e+00> : vector<64x64xf32>
    %172 = tpu.matmul %169, %171, %cst_69 {dimension_numbers = #tpu.dot_dimension_numbers<[1], [0], [0], [1], [0, 0, 1, 1], [], []>} : vector<64x576xbf16>, vector<576x64xbf16>, vector<64x64xf32> -> vector<64x64xf32>
    %c0_70 = arith.constant 0 : index
    %c0_71 = arith.constant 0 : index
    %173 = vector.load %arg16[%c0_70, %c0_71] : memref<64x1xf32, #tpu.memory_space<vmem>>, vector<64x1xf32>
    %174 = vector.broadcast %173 : vector<64x1xf32> to vector<64x64xf32>
    %175 = arith.addf %172, %174 : vector<64x64xf32>
    %c0_72 = arith.constant 0 : index
    %c0_73 = arith.constant 0 : index
    %176 = vector.load %arg17[%c0_72, %c0_73] : memref<64x32xbf16, #tpu.memory_space<vmem>>, vector<64x32xbf16>
    %177 = arith.truncf %1 : vector<32x64xf32> to vector<32x64xbf16>
    %cst_74 = arith.constant dense<0.000000e+00> : vector<64x64xf32>
    %178 = tpu.matmul %176, %177, %cst_74 {dimension_numbers = #tpu.dot_dimension_numbers<[1], [0], [0], [1], [0, 0, 1, 1], [], []>} : vector<64x32xbf16>, vector<32x64xbf16>, vector<64x64xf32> -> vector<64x64xf32>
    %179 = arith.addf %175, %178 : vector<64x64xf32>
    %c0_75 = arith.constant 0 : index
    %c0_76 = arith.constant 0 : index
    %c0_77 = arith.constant 0 : index
    %180 = vector.load %arg18[%c0_75, %c0_76, %c0_77] : memref<1x64x64xf32, #tpu.memory_space<vmem>>, vector<1x64x64xf32>
    %181 = vector.shape_cast %180 : vector<1x64x64xf32> to vector<64x64xf32>
    %182 = vector.shape_cast %179 : vector<64x64xf32> to vector<1x64x64xf32>
    tpu.vector_store %arg18[%c0_75, %c0_76, %c0_77], %182 {strides = array<i32>} : memref<1x64x64xf32, #tpu.memory_space<vmem>>, vector<1x64x64xf32>,
    return
  }
  func.func @transform_0(%arg0: i32) -> (i32, i32, i32) {
    %c0_i32 = arith.constant 0 : i32
    %c0_i32_0 = arith.constant 0 : i32
    %c0_i32_1 = arith.constant 0 : i32
    return %arg0, %c0_i32, %c0_i32_0 : i32, i32, i32
  }
  func.func @transform_1(%arg0: i32) -> (i32, i32, i32) {
    %c0_i32 = arith.constant 0 : i32
    %c0_i32_0 = arith.constant 0 : i32
    %c0_i32_1 = arith.constant 0 : i32
    return %arg0, %c0_i32, %c0_i32_0 : i32, i32, i32
  }
  func.func @transform_2(%arg0: i32) -> (i32, i32) {
    %c0_i32 = arith.constant 0 : i32
    %c0_i32_0 = arith.constant 0 : i32
    %c0_i32_1 = arith.constant 0 : i32
    return %c0_i32, %c0_i32_0 : i32, i32
  }
  func.func @transform_3(%arg0: i32) -> (i32, i32) {
    %c0_i32 = arith.constant 0 : i32
    %c0_i32_0 = arith.constant 0 : i32
    %c0_i32_1 = arith.constant 0 : i32
    return %c0_i32, %c0_i32_0 : i32, i32
  }
  func.func @transform_4(%arg0: i32) -> (i32, i32) {
    %c0_i32 = arith.constant 0 : i32
    %c0_i32_0 = arith.constant 0 : i32
    %c0_i32_1 = arith.constant 0 : i32
    return %c0_i32, %c0_i32_0 : i32, i32
  }
  func.func @transform_5(%arg0: i32) -> (i32, i32) {
    %c0_i32 = arith.constant 0 : i32
    %c0_i32_0 = arith.constant 0 : i32
    %c0_i32_1 = arith.constant 0 : i32
    return %c0_i32, %c0_i32_0 : i32, i32
  }
  func.func @transform_6(%arg0: i32) -> (i32, i32) {
    %c0_i32 = arith.constant 0 : i32
    %c0_i32_0 = arith.constant 0 : i32
    %c0_i32_1 = arith.constant 0 : i32
    return %c0_i32, %c0_i32_0 : i32, i32
  }
  func.func @transform_7(%arg0: i32) -> (i32, i32) {
    %c0_i32 = arith.constant 0 : i32
    %c0_i32_0 = arith.constant 0 : i32
    %c0_i32_1 = arith.constant 0 : i32
    return %c0_i32, %c0_i32_0 : i32, i32
  }
  func.func @transform_8(%arg0: i32) -> (i32, i32) {
    %c0_i32 = arith.constant 0 : i32
    %c0_i32_0 = arith.constant 0 : i32
    %c0_i32_1 = arith.constant 0 : i32
    return %c0_i32, %c0_i32_0 : i32, i32
  }
  func.func @transform_9(%arg0: i32) -> (i32, i32) {
    %c0_i32 = arith.constant 0 : i32
    %c0_i32_0 = arith.constant 0 : i32
    %c0_i32_1 = arith.constant 0 : i32
    return %c0_i32, %c0_i32_0 : i32, i32
  }
  func.func @transform_10(%arg0: i32) -> (i32, i32) {
    %c0_i32 = arith.constant 0 : i32
    %c0_i32_0 = arith.constant 0 : i32
    %c0_i32_1 = arith.constant 0 : i32
    return %c0_i32, %c0_i32_0 : i32, i32
  }
  func.func @transform_11(%arg0: i32) -> (i32, i32) {
    %c0_i32 = arith.constant 0 : i32
    %c0_i32_0 = arith.constant 0 : i32
    %c0_i32_1 = arith.constant 0 : i32
    return %c0_i32, %c0_i32_0 : i32, i32
  }
  func.func @transform_12(%arg0: i32) -> (i32, i32) {
    %c0_i32 = arith.constant 0 : i32
    %c0_i32_0 = arith.constant 0 : i32
    %c0_i32_1 = arith.constant 0 : i32
    return %c0_i32, %c0_i32_0 : i32, i32
  }
  func.func @transform_13(%arg0: i32) -> (i32, i32) {
    %c0_i32 = arith.constant 0 : i32
    %c0_i32_0 = arith.constant 0 : i32
    %c0_i32_1 = arith.constant 0 : i32
    return %c0_i32, %c0_i32_0 : i32, i32
  }
  func.func @transform_14(%arg0: i32) -> (i32, i32) {
    %c0_i32 = arith.constant 0 : i32
    %c0_i32_0 = arith.constant 0 : i32
    %c0_i32_1 = arith.constant 0 : i32
    return %c0_i32, %c0_i32_0 : i32, i32
  }
  func.func @transform_15(%arg0: i32) -> (i32, i32) {
    %c0_i32 = arith.constant 0 : i32
    %c0_i32_0 = arith.constant 0 : i32
    %c0_i32_1 = arith.constant 0 : i32
    return %c0_i32, %c0_i32_0 : i32, i32
  }
  func.func @transform_16(%arg0: i32) -> (i32, i32) {
    %c0_i32 = arith.constant 0 : i32
    %c0_i32_0 = arith.constant 0 : i32
    %c0_i32_1 = arith.constant 0 : i32
    return %c0_i32, %c0_i32_0 : i32, i32
  }
  func.func @transform_17(%arg0: i32) -> (i32, i32, i32) {
    %c0_i32 = arith.constant 0 : i32
    %c0_i32_0 = arith.constant 0 : i32
    %c0_i32_1 = arith.constant 0 : i32
    return %arg0, %c0_i32, %c0_i32_0 : i32, i32, i32
  }
}

</mosaic_0001>

<bundles_post_ra>
// kernel: tpu_custom_call.1
= control target key start
LH: loop header
LB: loop body
LE: loop exit
PB: predicated region body
PF: predicated region fallthrough
CT: control target
= control target key end

     0   :  { %s5914_s0 = inlined_call_operand.vmem [shape: f32[2,32,64], index: 0, kind: input, shape index: {}]   ;;  %s5915_s1 = inlined_call_operand.vmem [shape: f32[2,32,1], index: 1, kind: input, shape index: {}]   ;;  %s5916_s2 = inlined_call_operand.vmem [shape: f32[32,1], index: 2, kind: input, shape index: {}]   ;;  %s5917_s3 = inlined_call_operand.vmem [shape: f32[32,1], index: 3, kind: input, shape index: {}]   ;;  %s5918_s4 = inlined_call_operand.vmem [shape: f32[32,32], index: 4, kind: input, shape index: {}]   ;;  %s5919_s5 = inlined_call_operand.vmem [shape: f32[32,32], index: 5, kind: input, shape index: {}]   ;;  %s5920_s6 = inlined_call_operand.vmem [shape: bf16[64,288], index: 6, kind: input, shape index: {}]   ;;  %s5921_s7 = inlined_call_operand.vmem [shape: f32[64,1], index: 7, kind: input, shape index: {}]   ;;  %s5922_s8 = inlined_call_operand.vmem [shape: f32[64,32], index: 8, kind: input, shape index: {}]   ;;  %s5923_s9 = inlined_call_operand.vmem [shape: f32[64,1], index: 9, kind: input, shape index: {}]   ;;  %s5924_s10 = inlined_call_operand.vmem [shape: f32[64,1], index: 10, kind: input, shape index: {}]   ;;  %s5925_s11 = inlined_call_operand.vmem [shape: f32[64,1], index: 11, kind: input, shape index: {}]   ;;  %s5926_s12 = inlined_call_operand.vmem [shape: f32[32,64], index: 12, kind: input, shape index: {}]   ;;  %s5927_s13 = inlined_call_operand.vmem [shape: f32[64,32], index: 13, kind: input, shape index: {}]   ;;  %s5928_s14 = inlined_call_operand.vmem [shape: bf16[64,576], index: 14, kind: input, shape index: {}]   ;;  %s5929_s15 = inlined_call_operand.vmem [shape: f32[64,1], index: 15, kind: input, shape index: {}]   ;;  %s5930_s16 = inlined_call_operand.vmem [shape: bf16[64,32], index: 16, kind: input, shape index: {}]   ;;  %s5931_s17 = inlined_call_operand.hbm [shape: f32[2,64,64], index: 17, kind: output, shape index: {}]  }
   0x1   :  { %5952 = sst [smem:[#allocation8_spill]] %s5914_s0 }
   0x2   :  { %5953 = sst [smem:[#allocation9_spill]] %s5915_s1 }
   0x3   :  { %5954 = sst [smem:[#allocation10_spill]] %s5916_s2 }
   0x4   :  { %5955 = sst [smem:[#allocation11_spill]] %s5917_s3 }
   0x5   :  { %5956 = sst [smem:[#allocation12_spill]] %s5918_s4 }
   0x6   :  { %5957 = sst [smem:[#allocation13_spill]] %s5919_s5 }
   0x7   :  { %22 = vsyncpa [#allocation3], 0 }
   0x8   :  { %24 = vsyncpa [#allocation3 + $0x1], 0  ;;  %s4908_s24 = smov 0   ;;  %s4910_s25 = smov 0  }
   0x9   :  { %s4912_s26 = smov 0   ;;  %s4914_s27 = smov 0  }
   0xa LB: > { %5958 = sst [smem:[#allocation5_spill]] %s4800_s26  ;;  %s4929_s28 = sadd.s32 4294967295, %s4804_s27   ;;  %s4804_s27 = sphi %s4914_s27, %s5994_s27   ;;  %s4800_s26 = sphi %s4912_s26, %s5996_s26   ;;  %s4796_s25 = sphi %s4910_s25, %s5998_s25   ;;  %s4792_s24 = sphi %s4908_s24, %s5997_s24  }
   0xb   : > { %s3557_s29 = sadd.s32 4294967294, %s4804_s27   ;;  %s4933_s0 = sadd.s32 1, %s4804_s27  }
   0xc   : > { %5959 = sst [smem:[#allocation6_spill]] %s4933_s0  ;;  %s404_s30 = sadd.s32 1, %s4800_s26 }
   0xd   : > { %s401_s18 = ssub.s32 %s4804_s27, %s4933_s0  ;;  %p414_p0 = scmp.ne.s32.totalorder %s4800_s26, %s4796_s25 }
   0xe   : > { %p402_p1 = scmp.eq.s32.totalorder %s401_s18, 0  ;;  %p415_p2 = scmp.eq.s32.totalorder %s4929_s28, 1 }
   0xf   : > { %p420_p3 = scmp.ne.s32.totalorder %s4796_s25, %s4792_s24  ;;  %p421_p4 = scmp.eq.s32.totalorder %s3557_s29, 1 }
  0x10   : > { %s4944_s19 = scalar_select %p402_p1, %s4800_s26, %s404_s30  }
  0x11   : > { %p4946_p5 = por %p415_p2, %p414_p0  ;;  %p4950_p6 = por %p421_p4, %p420_p3 }
  0x12   : > { %5960 = sst [smem:[#allocation7_spill]] %s4944_s19  ;;  %p3560_p7 = scmp.ge.s32.totalorder %s4804_s27, 1 }
  0x13   : > { %p500_p8 = scmp.lt.s32.totalorder %s4804_s27, 3 }
  0x15   : > { %p501_p9 = pnand %p3560_p7, %p500_p8 }
  0x16   : > { %p557_p10 = scmp.lt.s32.totalorder (!%p501_p9), %s4929_s28, 1  ;;  %s5963_s30 = sld [smem:[#allocation8_spill]] (!%p501_p9) }
  0x17   : > { %504 = sbr.rel (%p501_p9) target bundleno = 2468 (0x9a4), region = 88  ;;  %s5964_s4 = sld [smem:[#allocation12_spill]] (!%p501_p9) }
  0x18   : > { %s5965_s5 = sld [smem:[#allocation13_spill]] (!%p501_p9)  ;;  %s5942_s0 = smov (!%p501_p9), 120  }
  0x19   : > { %s5966_s2 = sld [smem:[#allocation10_spill]] (!%p501_p9)  ;;  %s5938_s19 = smov (!%p501_p9), 1  }
  0x1a   : > { %s5967_s3 = sld [smem:[#allocation11_spill]] (!%p501_p9)  ;;  %s5944_s23 = smov (!%p501_p9), 7  }
  0x1b   : > { %s5946_s29 = smov (!%p501_p9), 127   ;;  %s5992_s26 = smov (!%p501_p9), 121  }
  0x1c   : > { %s4958_s21 = scalar_select %p557_p10, %s4929_s28, 1  ;;  %vm608_vm0 = vcmask 523264   ;;  %vm637_vm1 = vcmask 261120   ;;  %v4806_v30 = vmov 0   ;;  %vm1293_vm4 = vcmask 449536  }
  0x1d   : > { %v600_v16 = vld [vmem:[%s5964_s4] sm:$0xff]  ;;  %v601_v22 = vld [vmem:[%s5964_s4 + $0x8] sm:$0xff]  ;;  %v602_v24 = vld [vmem:[%s5964_s4 + $0x10] sm:$0xff]  ;;  %4362 = vset.pattern.permute.xlu1 %v4806_v30  ;;  %4363 = vset.pattern.permute.xlu0 %v4806_v30  ;;  %vm1276_vm6 = vcmask 457728   ;;  %vm1225_vm7 = vcmask 7168   ;;  %vm1259_vm11 = vcmask 465920  }
  0x1e   : > { %s5932_s22 = sshll.u32 %s4958_s21, 5  ;;  %4120 = vmatprep.mubr.msk.f32.mxu0 %vm637_vm1, %v600_v16  ;;  %v603_v26 = vld [vmem:[%s5964_s4 + $0x18] sm:$0xff]  ;;  %v604_v28 = vld [vmem:[%s5965_s5] sm:$0xff]  ;;  %v605_v39 = vld [vmem:[%s5965_s5 + $0x8] sm:$0xff]  ;;  %s5936_s4 = smov 119   ;;  %vm1208_vm12 = vcmask 56320  }
  0x1f   : > { %s4966_s18 = scalar_lea.vmem %s5963_s30, %s5932_s22  ;;  %4134 = vmatprep.mubr.msk.f32.mxu1 %vm637_vm1, %v604_v28  ;;  %v594_v29 = vld [vmem:[%s5966_s2 + $0x10] sm:$0xff]  ;;  %v595_v31 = vld [vmem:[%s5966_s2 + $0x18] sm:$0xff]  ;;  %s5940_s30 = smov 121   ;;  %vm5177_vm5 = vmpackc.low %vm1293_vm4, %vm1293_vm4 }
  0x20   : > { %v4969_v0 = vld [vmem:[%s4966_s18 + $0x18] sm:$0xff]  ;;  %v4972_v1 = vld [vmem:[%s4966_s18 + $0x10] sm:$0xff]  ;;  %v4975_v2 = vld [vmem:[%s4966_s18 + $0x8] sm:$0xff]  ;;  %s5948_s22 = smov 8  }
  0x21   : > { %v618_v3 = vsel %vm608_vm0, %v4969_v0, 0.0  ;;  %v612_v4 = vsel %vm608_vm0, %v4975_v2, 0.0  ;;  %v4982_v5 = vld [vmem:[%s4966_s18] sm:$0xff]  ;;  %v624_v6 = vmul.f32 %v4969_v0, %v4969_v0  ;;  %v623_v7 = vmul.f32 %v4972_v1, %v4972_v1  ;;  %v598_v32 = vld [vmem:[%s5967_s3 + $0x10] sm:$0xff]  ;;  %v607_v43 = vld [vmem:[%s5965_s5 + $0x18] sm:$0xff] }
  0x22   : > { %619 = vadd.xlane.f32.xlu0 %v618_v3  ;;  %613 = vadd.xlane.f32.xlu1 %v612_v4  ;;  %v615_v8 = vsel %vm608_vm0, %v4972_v1, 0.0  ;;  %v609_v9 = vsel %vm608_vm0, %v4982_v5, 0.0  ;;  %v622_v12 = vmul.f32 %v4975_v2, %v4975_v2  ;;  %v621_v13 = vmul.f32 %v4982_v5, %v4982_v5  ;;  %v606_v40 = vld [vmem:[%s5965_s5 + $0x10] sm:$0xff]  ;;  %v599_v44 = vld [vmem:[%s5967_s3 + $0x18] sm:$0xff]  ;;  %vm5185_vm8 = vmpackc.low %vm1276_vm6, %vm1276_vm6 }
  0x23   : > { %v634_v10 = vsel %vm608_vm0, %v624_v6, 0.0  ;;  %v631_v11 = vsel %vm608_vm0, %v623_v7, 0.0  ;;  %v593_v7 = vld [vmem:[%s5966_s2 + $0x8] sm:$0xff]  ;;  %vm3600_vm9 = vmneg %vm1225_vm7 }
  0x24   : > { %v628_v14 = vsel %vm608_vm0, %v622_v12, 0.0  ;;  %v625_v15 = vsel %vm608_vm0, %v621_v13, 0.0  ;;  %v596_v12 = vld [vmem:[%s5967_s3] sm:$0xff]  ;;  %vm5198_vm10 = vmpackc.low %vm3600_vm9, %vm3600_vm9  ;;  %vm1166_vm9 = vcmask 72704  }
  0x25   : > { %vm5211_vm13 = vmpackc.low %vm1259_vm11, %vm1259_vm11 }
  0x26   : > { %616 = vadd.xlane.f32.xlu0 %v615_v8  ;;  %610 = vadd.xlane.f32.xlu1 %v609_v9  ;;  %v597_v9 = vld [vmem:[%s5967_s3 + $0x8] sm:$0xff]  ;;  %vm3610_vm14 = vmneg %vm1208_vm12 }
  0x27   : > { %vm5225_vm15 = vmpackc.low %vm3610_vm14, %vm3610_vm14 }
  0x28   : > { %vm3630_vm11 = vmneg %vm1166_vm9 }
  0x29   : > { %vm5275_vm12 = vmpackc.low %vm3630_vm11, %vm3630_vm11 }
  0x2a   : > { %635 = vadd.xlane.f32.xlu0 %v634_v10  ;;  %632 = vadd.xlane.f32.xlu1 %v631_v11  ;;  %v592_v11 = vld [vmem:[%s5966_s2] sm:$0xff]  ;;  %s5989_s2 = smov 1  }
  0x2e   : > { %629 = vadd.xlane.f32.xlu0 %v628_v14  ;;  %626 = vadd.xlane.f32.xlu1 %v625_v15 }
  0x3f   : > { %1078 = vperm.xlu1 %4362, %v594_v29  }
  0x43   : > { %1083 = vperm.xlu1 %4362, %v595_v31  }
  0x44   : > { %1107 = vperm.xlu0 %4363, %v599_v44  }
  0x47   : > { %1102 = vperm.xlu1 %4362, %v598_v32  }
  0xab   : > { %v620_v17 = vpop.xlane.xlu0 %619  ;;  %v614_v18 = vpop.xlane.xlu1 %613 }
  0xac   : > { %4112 = vmatprep.subr.mxu0 %v620_v17 }
  0xad   : > { %4113 = vmatpush3.msra.mxu0 %v620_v17 }
  0xaf   : > { %v617_v19 = vpop.xlane.xlu0 %616  ;;  %v611_v20 = vpop.xlane.xlu1 %610 }
  0xb0   : > { %4114 = vmatprep.subr.mxu0 %v617_v19 }
  0xb1   : > { %4115 = vmatpush3.msra.mxu0 %v617_v19 }
  0xb2   : > { %4116 = vmatprep.subr.mxu0 %v614_v18 }
  0xb3   : > { %4117 = vmatpush3.msra.mxu0 %v614_v18  ;;  %v636_v21 = vpop.xlane.xlu0 %635  ;;  %v633_v23 = vpop.xlane.xlu1 %632 }
  0xb4   : > { %4118 = vmatprep.subr.mxu0 %v611_v20 }
  0xb5   : > { %4119 = vmatpush3.msra.mxu0 %v611_v20 }
  0xb6   : > { %4121 = vmatmul.mubr.msk.f32.vlgmr.msra.gmra.mxu0 %vm637_vm1, %v601_v22  ;;  %4140 = vmatprep.subr.mxu0 %v636_v21 }
  0xb7   : > { %4141 = vmatpush3.msra.mxu0 %v636_v21  ;;  %v630_v25 = vpop.xlane.xlu0 %629  ;;  %4123 = vmatprep.mubr.msk.f32.mxu0 %vm637_vm1, %v602_v24  ;;  %v627_v27 = vpop.xlane.xlu1 %626 }
  0xb8   : > { %4142 = vmatprep.subr.mxu0 %v633_v23 }
  0xb9   : > { %4143 = vmatpush3.msra.mxu0 %v633_v23 }
  0xba   : > { %4124 = vmatmul.mubr.msk.f32.gmra.mxu0 %vm637_vm1, %v603_v26  ;;  %4144 = vmatprep.subr.mxu0 %v630_v25 }
  0xbb   : > { %4145 = vmatpush3.msra.mxu0 %v630_v25  ;;  %4148 = vmatprep.mubr.msk.f32.mxu0 %vm637_vm1, %v600_v16  ;;  %v1079_v13 = vpop.permute.xlu1 %1078 }
  0xbc   : > { %4146 = vmatprep.subr.mxu0 %v627_v27 }
  0xbd   : > { %4147 = vmatpush3.msra.mxu0 %v627_v27 }
  0xbe   : > { %4149 = vmatmul.mubr.msk.f32.vlgmr.msra.gmra.mxu0 %vm637_vm1, %v601_v22 }
  0xbf   : > { %4151 = vmatprep.mubr.msk.f32.mxu0 %vm637_vm1, %v602_v24  ;;  %v1084_v14 = vpop.permute.xlu1 %1083  ;;  %v1108_v17 = vpop.permute.xlu0 %1107 }
  0xc2   : > { %4152 = vmatmul.mubr.msk.f32.gmra.mxu0 %vm637_vm1, %v603_v26 }
  0xc3   : > { %v1103_v15 = vpop.permute.xlu1 %1102 }
 0x176   : > { %v4122_v33 = vpop.f32.mrf.mxu0 }
 0x178   : > { %v716_v34 = vpop.f32.mrf.mxu0 }
 0x17a   : > { %v4125_v35 = vpop.f32.mrf.mxu0 }
 0x17b   : > { %4126 = vmatprep.subr.mxu1 %v4125_v35 }
 0x17c   : > { %v726_v36 = vpop.f32.mrf.mxu0  ;;  %4127 = vmatpush3.msra.mxu1 %v4125_v35 }
 0x17d   : > { %4128 = vmatprep.subr.mxu1 %v726_v36 }
 0x17e   : > { %4129 = vmatpush3.msra.mxu1 %v726_v36  ;;  %v4150_v37 = vpop.f32.mrf.mxu0 }
 0x17f   : > { %4130 = vmatprep.subr.mxu1 %v4122_v33 }
 0x180   : > { %4131 = vmatpush3.msra.mxu1 %v4122_v33  ;;  %v898_v38 = vpop.f32.mrf.mxu0 }
 0x181   : > { %4132 = vmatprep.subr.mxu1 %v716_v34 }
 0x182   : > { %4133 = vmatpush3.msra.mxu1 %v716_v34  ;;  %v4153_v41 = vpop.f32.mrf.mxu0 }
 0x183   : > { %4135 = vmatmul.mubr.msk.f32.vlgmr.msra.gmra.mxu1 %vm637_vm1, %v605_v39  ;;  %4154 = vmatprep.subr.mxu1 %v4153_v41 }
 0x184   : > { %v908_v42 = vpop.f32.mrf.mxu0  ;;  %4155 = vmatpush3.msra.mxu1 %v4153_v41  ;;  %4137 = vmatprep.mubr.msk.f32.mxu1 %vm637_vm1, %v606_v40 }
 0x185   : > { %4156 = vmatprep.subr.mxu1 %v908_v42 }
 0x186   : > { %4157 = vmatpush3.msra.mxu1 %v908_v42 }
 0x187   : > { %4138 = vmatmul.mubr.msk.f32.gmra.mxu1 %vm637_vm1, %v607_v43  ;;  %4158 = vmatprep.subr.mxu1 %v4150_v37 }
 0x188   : > { %4159 = vmatpush3.msra.mxu1 %v4150_v37  ;;  %4162 = vmatprep.mubr.msk.f32.mxu1 %vm637_vm1, %v604_v28 }
 0x189   : > { %4160 = vmatprep.subr.mxu1 %v898_v38 }
 0x18a   : > { %4161 = vmatpush3.msra.mxu1 %v898_v38 }
 0x18b   : > { %4163 = vmatmul.mubr.msk.f32.vlgmr.msra.gmra.mxu1 %vm637_vm1, %v605_v39 }
 0x18c   : > { %4165 = vmatprep.mubr.msk.f32.mxu1 %vm637_vm1, %v606_v40 }
 0x18f   : > { %4166 = vmatmul.mubr.msk.f32.gmra.mxu1 %vm637_vm1, %v607_v43 }
 0x243   : > { %v4136_v45 = vpop.f32.mrf.mxu1 }
 0x244   : > { %1017 = vperm.xlu1 %4362, %v4136_v45   ;;  %v1003_v49 = vmul.f32 %v4136_v45, %v4136_v45 }
 0x245   : > { %v813_v46 = vpop.f32.mrf.mxu1 }
 0x246   : > { %v1002_v51 = vmul.f32 %v813_v46, %v813_v46 }
 0x247   : > { %v4139_v47 = vpop.f32.mrf.mxu1 }
 0x248   : > { %1012 = vperm.xlu1 %4362, %v813_v46   ;;  %v1005_v54 = vmul.f32 %v4139_v47, %v4139_v47 }
 0x249   : > { %v823_v48 = vpop.f32.mrf.mxu1 }
 0x24a   : > { %1022 = vperm.xlu0 %4363, %v823_v48   ;;  %v1004_v58 = vmul.f32 %v823_v48, %v823_v48 }
 0x24b   : > { %v4164_v50 = vpop.f32.mrf.mxu1 }
 0x24c   : > { %v1007_v52 = vsub.f32 %v4164_v50, %v1003_v49  ;;  %1027 = vperm.xlu1 %4362, %v4139_v47  }
 0x24d   : > { %v983_v53 = vpop.f32.mrf.mxu1 }
 0x24e   : > { %v1035_v55 = vadd.f32 1e-05, %v1007_v52  ;;  %v1006_v56 = vsub.f32 %v983_v53, %v1002_v51  ;;  %v572_v51 = vlaneseq }
 0x24f   : > { %v4167_v57 = vpop.f32.mrf.mxu1 }
 0x250   : > { %4652 = vrsqrt.f32 %v1035_v55  ;;  %v1034_v59 = vadd.f32 1e-05, %v1006_v56  ;;  %v1009_v60 = vsub.f32 %v4167_v57, %v1005_v54  ;;  %v573_v54 = vand.u32 127, %v572_v51 }
 0x251   : > { %v993_v61 = vpop.f32.mrf.mxu1 }
 0x252   : > { %4654 = vrsqrt.f32 %v1034_v59  ;;  %v1037_v62 = vadd.f32 1e-05, %v1009_v60  ;;  %v1008_v63 = vsub.f32 %v993_v61, %v1004_v58  ;;  %v578_v55 = vand.u32 7, %v573_v54 }
 0x253   : > { %v4807_v61 = vmov 0.0  }
 0x254   : > { %4656 = vrsqrt.f32 %v1037_v62  ;;  %v1036_v3 = vadd.f32 1e-05, %v1008_v63  ;;  %vm586_vm2 = vcmp.ne.s32.totalorder %v578_v55, 0  ;;  %vm589_vm3 = vcmp.ne.s32.totalorder %v578_v55, 7 }
 0x255   : > { %v5072_v62 = vsel %vm586_vm2, 1.0, %v4807_v61  ;;  %vm1242_vm2 = vcmask 515072  }
 0x256   : > { %4658 = vrsqrt.f32 %v1036_v3  ;;  %vm5237_vm4 = vmpackc.low %vm1242_vm2, %vm1242_vm2 }
 0x25d   : > { %v4653_v4 = vpop.eup %4652 }
 0x25e   : > { %1049 = vperm.xlu0 %4363, %v4653_v4  }
 0x25f   : > { %v4655_v6 = vpop.eup %4654 }
 0x260   : > { %1044 = vperm.xlu1 %4362, %v4655_v6  }
 0x261   : > { %v4657_v8 = vpop.eup %4656 }
 0x262   : > { %1073 = vperm.xlu0 %4363, %v593_v7   ;;  %v4604_v7 = vld [vmem:[%s5920_s6 + $0x8] ss:$12 sps:$4 sm:$0xff]  }
 0x263   : > { %v4659_v10 = vpop.eup %4658  ;;  %4172 = vmatprep.mubr.msk.bf16.mxu1 %vm637_vm1, %v4604_v7 }
 0x264   : > { %1059 = vperm.xlu1 %4362, %v4657_v8  }
 0x266   : > { %1097 = vperm.xlu0 %4363, %v597_v9  }
 0x268   : > { %1054 = vperm.xlu1 %4362, %v4659_v10  }
 0x26c   : > { %1068 = vperm.xlu1 %4362, %v592_v11  }
 0x270   : > { %1092 = vperm.xlu1 %4362, %v596_v12  }
 0x2bf   : > { %v1018_v16 = vpop.permute.xlu1 %1017 }
 0x2c0   : > { %v1031_v23 = vsub.f32 %v4975_v2, %v1018_v16 }
 0x2c3   : > { %v1013_v18 = vpop.permute.xlu1 %1012 }
 0x2c4   : > { %v1030_v38 = vsub.f32 %v4982_v5, %v1013_v18 }
 0x2c5   : > { %v1023_v19 = vpop.permute.xlu0 %1022 }
 0x2c6   : > { %v1032_v31 = vsub.f32 %v4972_v1, %v1023_v19 }
 0x2c7   : > { %v1028_v20 = vpop.permute.xlu1 %1027 }
 0x2c8   : > { %v1033_v25 = vsub.f32 %v4969_v0, %v1028_v20 }
 0x2d9   : > { %v1050_v21 = vpop.permute.xlu0 %1049 }
 0x2da   : > { %v1063_v26 = vmul.f32 %v1050_v21, %v1031_v23 }
 0x2db   : > { %v1045_v22 = vpop.permute.xlu1 %1044 }
 0x2dc   : > { %v1062_v0 = vmul.f32 %v1045_v22, %v1030_v38 }
 0x2dd   : > { %v1074_v24 = vpop.permute.xlu0 %1073 }
 0x2de   : > { %v1087_v28 = vmul.f32 %v1074_v24, %v1063_v26  ;;  %v4610_v24 = vld [vmem:[%s5920_s6 + $0x4] ss:$12 sps:$4 sm:$0xff]   ;;  %v1337_v26 = vld [vmem:[%s5921_s7 + $0x28] sm:$0xff] }
 0x2df   : > { %v1060_v27 = vpop.permute.xlu1 %1059  ;;  %1484 = vmatprep.mubr.bf16.mxu0 %v4610_v24 }
 0x2e0   : > { %v1065_v29 = vmul.f32 %v1060_v27, %v1033_v25  ;;  %v1339_v25 = vld [vmem:[%s5921_s7 + $0x38] sm:$0xff]  ;;  %v1338_v27 = vld [vmem:[%s5921_s7 + $0x30] sm:$0xff] }
 0x2e1   : > { %v1098_v30 = vpop.permute.xlu0 %1097 }
 0x2e2   : > { %v1089_v32 = vmul.f32 %v1084_v14, %v1065_v29  ;;  %v1111_v33 = vadd.f32 %v1098_v30, %v1087_v28  ;;  %v1336_v28 = vld [vmem:[%s5921_s7 + $0x20] sm:$0xff]  ;;  %v1335_v29 = vld [vmem:[%s5921_s7 + $0x18] sm:$0xff] }
 0x2e3   : > { %v1055_v34 = vpop.permute.xlu1 %1054  ;;  %v1806_v30 = vld [vmem:[%s5923_s9 + $0x38] sm:$0xff] }
 0x2e4   : > { %v1113_v35 = vadd.f32 %v1108_v17, %v1089_v32  ;;  %v3585_v36 = vmul.f32 -1.442695, %v1111_v33  ;;  %v1064_v37 = vmul.f32 %v1055_v34, %v1032_v31  ;;  %v1805_v31 = vld [vmem:[%s5923_s9 + $0x30] sm:$0xff]  ;;  %v1804_v34 = vld [vmem:[%s5923_s9 + $0x28] sm:$0xff] }
 0x2e5   : > { %v1334_v32 = vld [vmem:[%s5921_s7 + $0x10] sm:$0xff] }
 0x2e6   : > { %v3587_v39 = vmul.f32 -1.442695, %v1113_v35  ;;  %v1088_v2 = vmul.f32 %v1079_v13, %v1064_v37  ;;  %4660 = vpow2.f32 %v3585_v36  ;;  %v5093_v13 = vsel %vm589_vm3, 1.0, %v4807_v61  ;;  %v1332_v36 = vld [vmem:[%s5921_s7] sm:$0xff] }
 0x2e7   : > { %v1069_v40 = vpop.permute.xlu1 %1068  ;;  %vm1187_vm3 = vcmask 64512  }
 0x2e8   : > { %4662 = vpow2.f32 %v3587_v39  ;;  %v1112_v41 = vadd.f32 %v1103_v15, %v1088_v2  ;;  %v1086_v43 = vmul.f32 %v1069_v40, %v1062_v0  ;;  %vm3620_vm6 = vmneg %vm1187_vm3 }
 0x2e9   : > { %vm5246_vm7 = vmpackc.low %vm3620_vm6, %vm3620_vm6 }
 0x2ea   : > { %v3586_v42 = vmul.f32 -1.442695, %v1112_v41 }
 0x2eb   : > { %v1093_v44 = vpop.permute.xlu1 %1092 }
 0x2ec   : > { %4664 = vpow2.f32 %v3586_v42  ;;  %v1110_v1 = vadd.f32 %v1093_v44, %v1086_v43 }
 0x2ee   : > { %v3584_v45 = vmul.f32 -1.442695, %v1110_v1 }
 0x2f0   : > { %4666 = vpow2.f32 %v3584_v45 }
 0x2f3   : > { %v4661_v46 = vpop.eup %4660 }
 0x2f4   : > { %v1127_v49 = vadd.f32 1.0, %v4661_v46 }
 0x2f5   : > { %v4663_v47 = vpop.eup %4662 }
 0x2f6   : > { %v1129_v48 = vadd.f32 1.0, %v4663_v47 }
 0x2f8   : > { %4668 = vrcp.f32 %v1129_v48 }
 0x2f9   : > { %v4665_v5 = vpop.eup %4664  ;;  %4670 = vrcp.f32 %v1127_v49 }
 0x2fa   : > { %v1128_v50 = vadd.f32 1.0, %v4665_v5 }
 0x2fc   : > { %4672 = vrcp.f32 %v1128_v50 }
 0x2fd   : > { %v4667_v52 = vpop.eup %4666 }
 0x2fe   : > { %v1126_v53 = vadd.f32 1.0, %v4667_v52  ;;  %v4644_v52 = vld [vmem:[%s5928_s14 + $0x10] ss:$20 sps:$4 sm:$0xff]  }
 0x300   : > { %4674 = vrcp.f32 %v1126_v53 }
 0x305   : > { %v4669_v56 = vpop.eup %4668 }
 0x306   : > { %v4671_v57 = vpop.eup %4670  ;;  %v5068_v58 = vmul.f32 %v4669_v56, %v1113_v35  ;;  %v1803_v35 = vld [vmem:[%s5923_s9 + $0x20] sm:$0xff] }
 0x307   : > { %v5074_v63 = vmul.f32 %v4671_v57, %v1111_v33  ;;  %v1333_v33 = vld [vmem:[%s5921_s7 + $0x8] sm:$0xff] }
 0x308   : > { %v1149_v4 = vmul.f32 %v5072_v62, %v5068_v58  ;;  %v1145_v18 = vmul.f32 %v5093_v13, %v5068_v58 }
 0x309   : > { %v4673_v59 = vpop.eup %4672  ;;  %v1147_v12 = vmul.f32 %v5072_v62, %v5074_v63  ;;  %v1143_v22 = vmul.f32 %v5093_v13, %v5074_v63 }
 0x30a   : > { %v5070_v60 = vmul.f32 %v4673_v59, %v1112_v41 }
 0x30c   : > { %v1148_v3 = vmul.f32 %v5072_v62, %v5070_v60  ;;  %v1323_v8 = vpack.c.bf16 %v5068_v58, %v5070_v60  ;;  %v4374_v15 = vpack.i.bf16 %v5068_v58, %v5070_v60  ;;  %v1144_v17 = vmul.f32 %v5093_v13, %v5070_v60  ;;  %v1621_v58 = vld [vmem:[%s5922_s8 + $0x38] sm:$0xff] }
 0x30d   : > { %v4675_v6 = vpop.eup %4674 }
 0x30e   : > { %v5085_v9 = vmul.f32 %v4675_v6, %v1110_v1  ;;  %v4364_v10 = vpack.i.bf16 %v1149_v4, %v1148_v3  ;;  %v4384_v20 = vpack.i.bf16 %v1145_v18, %v1144_v17 }
 0x310   : > { %4365 = vrot.lane.b32.xlu1 %v4364_v10, %s5936_s4  ;;  %v1146_v11 = vmul.f32 %v5072_v62, %v5085_v9  ;;  %v1322_v14 = vpack.c.bf16 %v5074_v63, %v5085_v9  ;;  %v4379_v19 = vpack.i.bf16 %v5074_v63, %v5085_v9  ;;  %v1142_v21 = vmul.f32 %v5093_v13, %v5085_v9  ;;  %v4611_v63 = vld [vmem:[%s5920_s6 + $0x1c] ss:$12 sps:$4 sm:$0xff]   ;;  %v4613_v9 = vld [vmem:[%s5920_s6 + $0x18] ss:$12 sps:$4 sm:$0xff]  }
 0x312   : > { %v4369_v16 = vpack.i.bf16 %v1147_v12, %v1146_v11  ;;  %v4389_v23 = vpack.i.bf16 %v1143_v22, %v1142_v21  ;;  %v4606_v22 = vld [vmem:[%s5920_s6 + $0x38] ss:$12 sps:$4 sm:$0xff]  }
 0x314   : > { %4375 = vrot.lane.b32.xlu1 %v4374_v15, %s5942_s0  ;;  %4370 = vrot.lane.b32.xlu0 %v4369_v16, %s5936_s4  ;;  %s5968_s4 = sshll.u32 %s4958_s21, 5 }
 0x318   : > { %4380 = vrot.lane.b32.xlu1 %v4379_v19, %s5942_s0  ;;  %4385 = vrot.lane.b32.xlu0 %v4384_v20, %s5938_s19  ;;  %s5969_s0 = sld [smem:[#allocation9_spill]] }
 0x31c   : > { %4395 = vrot.lane.b32.xlu1 %v4384_v20, %s5940_s30  ;;  %4390 = vrot.lane.b32.xlu0 %v4389_v23, %s5938_s19  ;;  %s5950_s19 = smov 9  }
 0x31e   : > { %s566_s5 = scalar_lea.vmem %s5969_s0, %s5968_s4  ;;  %s5990_s4 = smov 7  }
 0x31f   : > { %v1585_v37 = vld [vmem:[%s566_s5 + $0x18] sm:$0xff]  ;;  %v5168_v39 = vld [vmem:[%s566_s5 + $0x10] sm:$0xff]  ;;  %v5170_v2 = vld [vmem:[%s566_s5 + $0x8] sm:$0xff] }
 0x320   : > { %4400 = vrot.lane.b32.xlu1 %v4389_v23, %s5940_s30  ;;  %4405 = vrot.lane.b32.xlu0 %v4364_v10, %s5944_s23  ;;  %v3671_v38 = vmul.f32 -1.442695, %v1585_v37  ;;  %v3670_v40 = vmul.f32 -1.442695, %v5168_v39  ;;  %v5173_v0 = vld [vmem:[%s566_s5] sm:$0xff]  ;;  %s5993_s30 = smov 119  }
 0x321   : > { %v3669_v41 = vmul.f32 -1.442695, %v5170_v2  ;;  %v3668_v42 = vmul.f32 -1.442695, %v5173_v0 }
 0x322   : > { %4676 = vpow2.f32 %v3671_v38 }
 0x323   : > { %4678 = vpow2.f32 %v3670_v40 }
 0x324   : > { %4420 = vrot.lane.b32.xlu1 %v4364_v10, %s5946_s29  ;;  %4410 = vrot.lane.b32.xlu0 %v4369_v16, %s5944_s23  ;;  %4680 = vpow2.f32 %v3669_v41  ;;  %s5987_s23 = smov 8  }
 0x325   : > { %4682 = vpow2.f32 %v3668_v42 }
 0x328   : > { %4425 = vrot.lane.b32.xlu1 %v4369_v16, %s5946_s29  ;;  %4415 = vrot.lane.b32.xlu0 %v4374_v15, %s5948_s22  ;;  %s5988_s29 = smov 127  }
 0x32c   : > { %4435 = vrot.lane.b32.xlu1 %v4384_v20, %s5950_s19  ;;  %4430 = vrot.lane.b32.xlu0 %v4379_v19, %s5948_s22  ;;  %v4605_v20 = vld [vmem:[%s5920_s6 + $0x20] ss:$12 sps:$4 sm:$0xff]   ;;  %s5991_s22 = smov 9  }
 0x32f   : > { %v4677_v43 = vpop.eup %4676 }
 0x330   : > { %1377 = vperm.xlu1 %4362, %v1339_v25   ;;  %4440 = vrot.lane.b32.xlu0 %v4389_v23, %s5950_s19  ;;  %v1601_v44 = vadd.f32 1.0, %v4677_v43  ;;  %v4679_v1 = vpop.eup %4678  ;;  %s5986_s19 = smov 120  }
 0x331   : > { %v4681_v45 = vpop.eup %4680  ;;  %v1600_v46 = vadd.f32 1.0, %v4679_v1 }
 0x332   : > { %4684 = vrcp.f32 %v1601_v44  ;;  %v4683_v47 = vpop.eup %4682  ;;  %v1599_v48 = vadd.f32 1.0, %v4681_v45 }
 0x333   : > { %4686 = vrcp.f32 %v1600_v46  ;;  %v1598_v49 = vadd.f32 1.0, %v4683_v47 }
 0x334   : > { %1367 = vperm.xlu1 %4362, %v1337_v26   ;;  %1372 = vperm.xlu0 %4363, %v1338_v27   ;;  %4688 = vrcp.f32 %v1599_v48  ;;  %v1614_v48 = vld [vmem:[%s5922_s8] sm:$0xff] }
 0x335   : > { %4690 = vrcp.f32 %v1598_v49 }
 0x338   : > { %1362 = vperm.xlu1 %4362, %v1336_v28   ;;  %1357 = vperm.xlu0 %4363, %v1335_v29  }
 0x33c   : > { %1844 = vperm.xlu1 %4362, %v1806_v30   ;;  %1839 = vperm.xlu0 %4363, %v1805_v31  }
 0x33f   : > { %v4685_v54 = vpop.eup %4684 }
 0x340   : > { %1352 = vperm.xlu1 %4362, %v1334_v32   ;;  %1347 = vperm.xlu0 %4363, %v1333_v33   ;;  %v1613_v10 = vmul.f32 %v4685_v54, %v1585_v37  ;;  %v4687_v15 = vpop.eup %4686 }
 0x341   : > { %v4689_v23 = vpop.eup %4688  ;;  %v1612_v28 = vmul.f32 %v4687_v15, %v5168_v39  ;;  %v1616_v15 = vld [vmem:[%s5922_s8 + $0x10] sm:$0xff] }
 0x342   : > { %v4691_v29 = vpop.eup %4690 }
 0x343   : > { %v1610_v40 = vmul.f32 %v4691_v29, %v5173_v0 }
 0x344   : > { %1834 = vperm.xlu1 %4362, %v1804_v34   ;;  %1829 = vperm.xlu0 %4363, %v1803_v35   ;;  %v1611_v35 = vmul.f32 %v4689_v23, %v5170_v2  ;;  %v4607_v2 = vld [vmem:[%s5920_s6 + $0x50] ss:$12 sps:$4 sm:$0xff]  }
 0x348   : > { %1342 = vperm.xlu1 %4362, %v1332_v36  }
 0x382   : > { %v4366_v5 = vpop.permute.xlu1 %4365 }
 0x383   : > { %v4368_v50 = vunpack.i.h.bf16 %v4366_v5  ;;  %v4367_v51 = vunpack.i.l.bf16 %v4366_v5 }
 0x385   : > { %v3659_v53 = vpack.c.bf16 %v4368_v50, %v4367_v51 }
 0x386   : > { %v4371_v55 = vpop.permute.xlu0 %4370  ;;  %v4376_v56 = vpop.permute.xlu1 %4375 }
 0x387   : > { %v4373_v57 = vunpack.i.h.bf16 %v4371_v55  ;;  %v4372_v59 = vunpack.i.l.bf16 %v4371_v55  ;;  %v4378_v61 = vunpack.i.h.bf16 %v4376_v56  ;;  %v4377_v3 = vunpack.i.l.bf16 %v4376_v56  ;;  %4168 = vmatprep.subr.msk.bf16.mxu1 %vm5177_vm5, %v3659_v53 }
 0x388   : > { %4169 = vmatpush3.bf16.msk.msra.mxu1 %vm5177_vm5, %v3659_v53 }
 0x389   : > { %v3662_v6 = vpack.c.bf16 %v4373_v57, %v4372_v59  ;;  %v3641_v7 = vpack.c.bf16 %v4378_v61, %v4377_v3 }
 0x38a   : > { %v4386_v11 = vpop.permute.xlu0 %4385  ;;  %v4381_v12 = vpop.permute.xlu1 %4380 }
 0x38b   : > { %v4388_v16 = vunpack.i.h.bf16 %v4386_v11  ;;  %v4387_v17 = vunpack.i.l.bf16 %v4386_v11  ;;  %v4383_v18 = vunpack.i.h.bf16 %v4381_v12  ;;  %v4382_v19 = vunpack.i.l.bf16 %v4381_v12  ;;  %3912 = vmatprep.subr.msk.bf16.mxu0 %vm5185_vm8, %v3641_v7  ;;  %4170 = vmatprep.subr.msk.bf16.mxu1 %vm5177_vm5, %v3662_v6 }
 0x38c   : > { %4171 = vmatpush3.bf16.msk.msra.mxu1 %vm5177_vm5, %v3662_v6 }
 0x38d   : > { %v3603_v24 = vpack.c.bf16 %v4388_v16, %v4387_v17  ;;  %v3644_v25 = vpack.c.bf16 %v4383_v18, %v4382_v19  ;;  %4180 = vmatprep.subr.mxu1 %v1613_v10 }
 0x38e   : > { %v4391_v26 = vpop.permute.xlu0 %4390  ;;  %v4396_v27 = vpop.permute.xlu1 %4395 }
 0x38f   : > { %v4393_v30 = vunpack.i.h.bf16 %v4391_v26  ;;  %v4392_v31 = vunpack.i.l.bf16 %v4391_v26  ;;  %v4398_v32 = vunpack.i.h.bf16 %v4396_v27  ;;  %v4397_v33 = vunpack.i.l.bf16 %v4396_v27  ;;  %3913 = vmatpush3.bf16.msk.msra.mxu0 %vm5198_vm10, %v3603_v24  ;;  %4173 = vmatmul.mubr.msk.bf16.vlgmr.msra.gmra.mxu1 %vm637_vm1, %v4605_v20  ;;  %v1617_v20 = vld [vmem:[%s5922_s8 + $0x18] sm:$0xff]  ;;  %v4629_v27 = vld [vmem:[%s5928_s14 + $0x34] ss:$20 sps:$4 sm:$0xff]  }
 0x390   : > { %3914 = vmatprep.subr.msk.bf16.mxu0 %vm5185_vm8, %v3644_v25  ;;  %4176 = vmatprep.mubr.msk.bf16.mxu1 %vm637_vm1, %v4606_v22  ;;  %v1618_v25 = vld [vmem:[%s5922_s8 + $0x20] sm:$0xff] }
 0x391   : > { %v3608_v36 = vpack.c.bf16 %v4393_v30, %v4392_v31  ;;  %v3647_v37 = vpack.c.bf16 %v4398_v32, %v4397_v33  ;;  %4181 = vmatpush3.msra.mxu1 %v1613_v10  ;;  %v1615_v10 = vld [vmem:[%s5922_s8 + $0x8] sm:$0xff]  ;;  %v1620_v32 = vld [vmem:[%s5922_s8 + $0x30] sm:$0xff] }
 0x392   : > { %v4406_v38 = vpop.permute.xlu0 %4405  ;;  %v4401_v39 = vpop.permute.xlu1 %4400  ;;  %4182 = vmatprep.subr.mxu1 %v1612_v28  ;;  %v4616_v33 = vld [vmem:[%s5920_s6 + $0x30] ss:$12 sps:$4 sm:$0xff]  }
 0x393   : > { %v4408_v41 = vunpack.i.h.bf16 %v4406_v38  ;;  %v4407_v42 = vunpack.i.l.bf16 %v4406_v38  ;;  %v4403_v43 = vunpack.i.h.bf16 %v4401_v39  ;;  %v4402_v44 = vunpack.i.l.bf16 %v4401_v39  ;;  %3915 = vmatpush3.bf16.msk.msra.mxu0 %vm5198_vm10, %v3608_v36  ;;  %4183 = vmatpush3.msra.mxu1 %v1612_v28  ;;  %v1619_v28 = vld [vmem:[%s5922_s8 + $0x28] sm:$0xff] }
 0x394   : > { %3916 = vmatprep.subr.msk.bf16.mxu0 %vm5211_vm13, %v3647_v37  ;;  %4184 = vmatprep.subr.mxu1 %v1611_v35  ;;  %v4619_v36 = vld [vmem:[%s5920_s6 + $0x48] ss:$12 sps:$4 sm:$0xff]  }
 0x395   : > { %v3613_v0 = vpack.c.bf16 %v4408_v41, %v4407_v42  ;;  %v3650_v45 = vpack.c.bf16 %v4403_v43, %v4402_v44  ;;  %4185 = vmatpush3.msra.mxu1 %v1611_v35  ;;  %v4617_v35 = vld [vmem:[%s5920_s6 + $0x4c] ss:$12 sps:$4 sm:$0xff]  }
 0x396   : > { %v4411_v46 = vpop.permute.xlu0 %4410  ;;  %v4421_v47 = vpop.permute.xlu1 %4420  ;;  %4186 = vmatprep.subr.mxu1 %v1610_v40 }
 0x397   : > { %v4413_v49 = vunpack.i.h.bf16 %v4411_v46  ;;  %v4412_v5 = vunpack.i.l.bf16 %v4411_v46  ;;  %v4423_v50 = vunpack.i.h.bf16 %v4421_v47  ;;  %v4422_v51 = vunpack.i.l.bf16 %v4421_v47  ;;  %3917 = vmatpush3.bf16.msk.msra.mxu0 %vm5225_vm15, %v3613_v0  ;;  %4177 = vmatmul.mubr.msk.bf16.gmra.mxu1 %vm637_vm1, %v4607_v2 }
 0x398   : > { %3918 = vmatprep.subr.msk.bf16.mxu0 %vm5211_vm13, %v3650_v45  ;;  %4187 = vmatpush3.msra.mxu1 %v1610_v40 }
 0x399   : > { %v3618_v54 = vpack.c.bf16 %v4413_v49, %v4412_v5  ;;  %v3653_v55 = vpack.c.bf16 %v4423_v50, %v4422_v51  ;;  %4188 = vmatprep.mubr.msk.f32.mxu1 %vm637_vm1, %v1614_v48  ;;  %v1802_v49 = vld [vmem:[%s5923_s9 + $0x18] sm:$0xff]  ;;  %v1801_v50 = vld [vmem:[%s5923_s9 + $0x10] sm:$0xff] }
 0x39a   : > { %v4416_v56 = vpop.permute.xlu0 %4415  ;;  %v4426_v57 = vpop.permute.xlu1 %4425 }
 0x39b   : > { %v4418_v59 = vunpack.i.h.bf16 %v4416_v56  ;;  %v4417_v61 = vunpack.i.l.bf16 %v4416_v56  ;;  %v4428_v3 = vunpack.i.h.bf16 %v4426_v57  ;;  %v4427_v6 = vunpack.i.l.bf16 %v4426_v57  ;;  %3919 = vmatpush3.bf16.msk.msra.mxu0 %vm5225_vm15, %v3618_v54  ;;  %v1800_v54 = vld [vmem:[%s5923_s9 + $0x8] sm:$0xff] }
 0x39c   : > { %3920 = vmatprep.subr.msk.bf16.mxu0 %vm5237_vm4, %v3653_v55  ;;  %v1799_v55 = vld [vmem:[%s5923_s9] sm:$0xff] }
 0x39d   : > { %v3623_v11 = vpack.c.bf16 %v4418_v59, %v4417_v61  ;;  %v3656_v12 = vpack.c.bf16 %v4428_v3, %v4427_v6 }
 0x39e   : > { %v4431_v16 = vpop.permute.xlu0 %4430  ;;  %v4436_v17 = vpop.permute.xlu1 %4435 }
 0x39f   : > { %v4433_v18 = vunpack.i.h.bf16 %v4431_v16  ;;  %v4432_v19 = vunpack.i.l.bf16 %v4431_v16  ;;  %3921 = vmatpush3.bf16.msk.msra.mxu0 %vm5246_vm7, %v3623_v11  ;;  %4189 = vmatmul.mubr.msk.f32.vlgmr.msra.gmra.mxu1 %vm637_vm1, %v1615_v10  ;;  %v4438_v23 = vunpack.i.h.bf16 %v4436_v17  ;;  %v4437_v24 = vunpack.i.l.bf16 %v4436_v17 }
 0x3a0   : > { %3922 = vmatprep.subr.msk.bf16.mxu0 %vm5237_vm4, %v3656_v12  ;;  %4191 = vmatprep.mubr.msk.f32.mxu1 %vm637_vm1, %v1616_v15 }
 0x3a1   : > { %v3628_v22 = vpack.c.bf16 %v4433_v18, %v4432_v19  ;;  %v3633_v29 = vpack.c.bf16 %v4438_v23, %v4437_v24 }
 0x3a2   : > { %v4441_v26 = vpop.permute.xlu0 %4440 }
 0x3a3   : > { %3923 = vmatpush3.bf16.msk.msra.mxu0 %vm5246_vm7, %v3628_v22  ;;  %4192 = vmatmul.mubr.msk.f32.gmra.mxu1 %vm637_vm1, %v1617_v20  ;;  %v4443_v30 = vunpack.i.h.bf16 %v4441_v26  ;;  %v4442_v31 = vunpack.i.l.bf16 %v4441_v26 }
 0x3a4   : > { %3924 = vmatprep.subr.bf16.mxu0 %v1323_v8  ;;  %4194 = vmatprep.mubr.msk.f32.mxu1 %vm637_vm1, %v1618_v25  ;;  %v4608_v8 = vld [vmem:[%s5920_s6] ss:$12 sps:$4 sm:$0xff]  }
 0x3a5   : > { %v3638_v60 = vpack.c.bf16 %v4443_v30, %v4442_v31 }
 0x3a7   : > { %3925 = vmatpush3.bf16.msk.msra.mxu0 %vm5275_vm12, %v3633_v29  ;;  %4195 = vmatmul.mubr.msk.f32.gmra.mxu1 %vm637_vm1, %v1619_v28 }
 0x3a8   : > { %3926 = vmatprep.subr.bf16.mxu0 %v1322_v14  ;;  %4197 = vmatprep.mubr.msk.f32.mxu1 %vm637_vm1, %v1620_v32  ;;  %v4614_v14 = vld [vmem:[%s5920_s6 + $0x34] ss:$12 sps:$4 sm:$0xff]  }
 0x3ab   : > { %3927 = vmatpush3.bf16.msk.msra.mxu0 %vm5275_vm12, %v3638_v60  ;;  %4198 = vmatmul.mubr.msk.f32.gmra.mxu1 %vm637_vm1, %v1621_v58  ;;  %v1378_v10 = vpop.permute.xlu1 %1377 }
 0x3ae   : > { %1485 = vmatmul.mubr.bf16.vlgmr.msra.gmra.mxu0 %v4608_v8 }
 0x3af   : > { %1492 = vmatprep.mubr.bf16.mxu0 %v4611_v63  ;;  %v1368_v15 = vpop.permute.xlu1 %1367  ;;  %v1373_v19 = vpop.permute.xlu0 %1372 }
 0x3b3   : > { %v1363_v17 = vpop.permute.xlu1 %1362  ;;  %v1358_v24 = vpop.permute.xlu0 %1357 }
 0x3b6   : > { %1493 = vmatmul.mubr.bf16.gmra.mxu0 %v4613_v9 }
 0x3b7   : > { %1500 = vmatprep.mubr.bf16.mxu0 %v4614_v14  ;;  %v1845_v22 = vpop.permute.xlu1 %1844  ;;  %v1840_v28 = vpop.permute.xlu0 %1839 }
 0x3bb   : > { %v1353_v25 = vpop.permute.xlu1 %1352  ;;  %v1348_v32 = vpop.permute.xlu0 %1347 }
 0x3be   : > { %1501 = vmatmul.mubr.bf16.gmra.mxu0 %v4616_v33 }
 0x3bf   : > { %1508 = vmatprep.mubr.bf16.mxu0 %v4617_v35  ;;  %v1835_v30 = vpop.permute.xlu1 %1834  ;;  %v1830_v9 = vpop.permute.xlu0 %1829 }
 0x3c3   : > { %v1343_v58 = vpop.permute.xlu1 %1342 }
 0x3c6   : > { %1509 = vmatmul.mubr.bf16.gmra.mxu0 %v4619_v36 }
 0x44f   : > { %v5319_v37 = vpop.f32.mrf.mxu1 }
 0x451   : > { %v5321_v38 = vpop.f32.mrf.mxu1 }
 0x453   : > { %v5323_v39 = vpop.f32.mrf.mxu1 }
 0x455   : > { %v5325_v40 = vpop.f32.mrf.mxu1 }
 0x457   : > { %v5327_v41 = vpop.f32.mrf.mxu1 }
 0x459   : > { %v5329_v42 = vpop.f32.mrf.mxu1 }
 0x45b   : > { %v5331_v43 = vpop.f32.mrf.mxu1 }
 0x45d   : > { %v5333_v44 = vpop.f32.mrf.mxu1 }
 0x45f   : > { %v4190_v2 = vpop.f32.mrf.mxu1 }
 0x461   : > { %v1712_v0 = vpop.f32.mrf.mxu1 }
 0x463   : > { %v4193_v45 = vpop.f32.mrf.mxu1 }
 0x464   : > { %1768 = vperm.xlu1 %4362, %v4193_v45  }
 0x465   : > { %v1722_v46 = vpop.f32.mrf.mxu1 }
 0x467   : > { %v4196_v47 = vpop.f32.mrf.mxu1 }
 0x468   : > { %1778 = vperm.xlu1 %4362, %v4196_v47  }
 0x469   : > { %v1732_v48 = vpop.f32.mrf.mxu1 }
 0x46a   : > { %1773 = vperm.xlu0 %4363, %v1732_v48  }
 0x46b   : > { %v4199_v5 = vpop.f32.mrf.mxu1 }
 0x46c   : > { %1824 = vperm.xlu1 %4362, %v1802_v49  }
 0x46d   : > { %v1742_v51 = vpop.f32.mrf.mxu1 }
 0x46e   : > { %1788 = vperm.xlu0 %4363, %v4199_v5   ;;  %v3928_v56 = vpop.f32.mrf.mxu0 }
 0x470   : > { %1819 = vperm.xlu1 %4362, %v1801_v50   ;;  %v3929_v57 = vpop.f32.mrf.mxu0 }
 0x472   : > { %1783 = vperm.xlu0 %4363, %v1742_v51   ;;  %v3931_v59 = vpop.f32.mrf.mxu0 }
 0x474   : > { %1814 = vperm.xlu1 %4362, %v1800_v54   ;;  %v3932_v61 = vpop.f32.mrf.mxu0 }
 0x476   : > { %1763 = vperm.xlu0 %4363, %v1722_v46   ;;  %v3934_v3 = vpop.f32.mrf.mxu0 }
 0x478   : > { %v3935_v6 = vpop.f32.mrf.mxu0 }
 0x479   : > { %v3936_v45 = vadd.f32 %v3935_v6, %v3934_v3 }
 0x47a   : > { %1758 = vperm.xlu0 %4363, %v4190_v2   ;;  %v3937_v11 = vpop.f32.mrf.mxu0 }
 0x47c   : > { %v3938_v12 = vpop.f32.mrf.mxu0 }
 0x47d   : > { %v3939_v50 = vadd.f32 %v3938_v12, %v3937_v11 }
 0x47e   : > { %1753 = vperm.xlu0 %4363, %v1712_v0   ;;  %v3940_v16 = vpop.f32.mrf.mxu0 }
 0x47f   : > { %v1498_v3 = vadd.f32 %v3939_v50, %v1358_v24 }
 0x480   : > { %v3941_v18 = vpop.f32.mrf.mxu0 }
 0x481   : > { %v3942_v8 = vadd.f32 %v3941_v18, %v3940_v16  ;;  %v3933_v16 = vadd.f32 %v3932_v61, %v3931_v59  ;;  %v1495_v18 = vadd.f32 %v3936_v45, %v1353_v25  ;;  %v3930_v61 = vadd.f32 %v3929_v57, %v3928_v56 }
 0x482   : > { %1809 = vperm.xlu0 %4363, %v1799_v55   ;;  %v3943_v20 = vpop.f32.mrf.mxu0  ;;  %v1563_v12 = vadd.f32 %v5323_v39, %v1498_v3 }
 0x483   : > { %v1503_v33 = vadd.f32 %v3942_v8, %v1363_v17  ;;  %v1490_v11 = vadd.f32 %v3933_v16, %v1348_v32  ;;  %v1487_v56 = vadd.f32 %v3930_v61, %v1343_v58  ;;  %v1871_v16 = vld [vmem:[%s5926_s12] sm:$0xff]  ;;  %v1868_v61 = vld [vmem:[%s5925_s11 + $0x28] sm:$0xff] }
 0x484   : > { %v3944_v23 = vpop.f32.mrf.mxu0  ;;  %4216 = vmatprep.mubr.msk.f32.mxu1 %vm608_vm0, %v1871_v16  ;;  %4258 = vmatprep.mubr.msk.f32.mxu0 %vm608_vm0, %v1871_v16  ;;  %v1881_v16 = vld [vmem:[%s5927_s13 + $0x30] sm:$0xff] }
 0x485   : > { %v3945_v35 = vadd.f32 %v3944_v23, %v3943_v20  ;;  %v1568_v49 = vadd.f32 %v5329_v42, %v1503_v33 }
 0x486   : > { %v3946_v26 = vpop.f32.mrf.mxu0 }
 0x487   : > { %v1506_v47 = vadd.f32 %v3945_v35, %v1368_v15 }
 0x488   : > { %v3947_v29 = vpop.f32.mrf.mxu0 }
 0x489   : > { %v3948_v36 = vadd.f32 %v3947_v29, %v3946_v26  ;;  %v1571_v17 = vadd.f32 %v5333_v44, %v1506_v47  ;;  %v1560_v44 = vadd.f32 %v5319_v37, %v1495_v18  ;;  %v1555_v37 = vadd.f32 %v5325_v40, %v1490_v11  ;;  %v1860_v11 = vld [vmem:[%s5924_s10 + $0x28] sm:$0xff] }
 0x48a   : > { %v3949_v31 = vpop.f32.mrf.mxu0 }
 0x48b   : > { %v1511_v48 = vadd.f32 %v3948_v36, %v1373_v19 }
 0x48c   : > { %v3950_v60 = vpop.f32.mrf.mxu0 }
 0x48d   : > { %v3951_v63 = vadd.f32 %v3950_v60, %v3949_v31 }
 0x48f   : > { %v1514_v2 = vadd.f32 %v3951_v63, %v1378_v10  ;;  %v1576_v10 = vadd.f32 %v5327_v41, %v1511_v48 }
 0x491   : > { %v1579_v5 = vadd.f32 %v5331_v43, %v1514_v2 }
 0x4df   : > { %v1769_v14 = vpop.permute.xlu1 %1768 }
 0x4e3   : > { %v1779_v46 = vpop.permute.xlu1 %1778 }
 0x4e4   : > { %v1796_v19 = vadd.f32 %v1779_v46, %v1571_v17 }
 0x4e5   : > { %v1774_v0 = vpop.permute.xlu0 %1773 }
 0x4e6   : > { %v1795_v54 = vadd.f32 %v1774_v0, %v1568_v49 }
 0x4e7   : > { %v1825_v6 = vpop.permute.xlu1 %1824 }
 0x4e8   : > { %v5353_v23 = vadd.f32 %v1830_v9, %v1795_v54 }
 0x4e9   : > { %v1789_v51 = vpop.permute.xlu0 %1788 }
 0x4ea   : > { %v1798_v55 = vadd.f32 %v1789_v51, %v1579_v5  ;;  %v1895_v26 = vsel %vm608_vm0, %v5353_v23, 0.0  ;;  %v1911_v48 = vmul.f32 %v5353_v23, %v5353_v23 }
 0x4eb   : > { %v1820_v29 = vpop.permute.xlu1 %1819 }
 0x4ec   : > { %v5350_v20 = vadd.f32 %v1845_v22, %v1798_v55  ;;  %v5361_v22 = vadd.f32 %v1835_v30, %v1796_v19  ;;  %v1927_v50 = vsel %vm608_vm0, %v1911_v48, 0.0  ;;  %v1869_v19 = vld [vmem:[%s5925_s11 + $0x30] sm:$0xff]  ;;  %v1876_v48 = vld [vmem:[%s5927_s13 + $0x8] sm:$0xff] }
 0x4ed   : > { %v1784_v15 = vpop.permute.xlu0 %1783 }
 0x4ee   : > { %v1797_v42 = vadd.f32 %v1784_v15, %v1576_v10  ;;  %v1904_v43 = vsel %vm608_vm0, %v5350_v20, 0.0  ;;  %v1898_v32 = vsel %vm608_vm0, %v5361_v22, 0.0  ;;  %v1914_v2 = vmul.f32 %v5350_v20, %v5350_v20  ;;  %v1862_v15 = vld [vmem:[%s5924_s10 + $0x38] sm:$0xff] }
 0x4ef   : > { %1905 = vadd.xlane.f32.xlu1 %v1904_v43  ;;  %v1815_v8 = vpop.permute.xlu1 %1814  ;;  %v1912_v46 = vmul.f32 %v5361_v22, %v5361_v22  ;;  %v1859_v43 = vld [vmem:[%s5924_s10 + $0x20] sm:$0xff] }
 0x4f0   : > { %v5357_v59 = vadd.f32 %v1840_v28, %v1797_v42  ;;  %v1794_v28 = vadd.f32 %v1769_v14, %v1563_v12  ;;  %v1552_v14 = vadd.f32 %v5321_v38, %v1487_v56  ;;  %v1936_v45 = vsel %vm608_vm0, %v1914_v2, 0.0  ;;  %v1870_v42 = vld [vmem:[%s5925_s11 + $0x38] sm:$0xff]  ;;  %v1857_v12 = vld [vmem:[%s5924_s10 + $0x10] sm:$0xff] }
 0x4f1   : > { %v1764_v41 = vpop.permute.xlu0 %1763  ;;  %v1930_v49 = vsel %vm608_vm0, %v1912_v46, 0.0 }
 0x4f2   : > { %v1793_v24 = vadd.f32 %v1764_v41, %v1560_v44  ;;  %v1901_v25 = vsel %vm608_vm0, %v5357_v59, 0.0  ;;  %v5370_v57 = vadd.f32 %v1825_v6, %v1794_v28  ;;  %v1913_v38 = vmul.f32 %v5357_v59, %v5357_v59  ;;  %v1861_v6 = vld [vmem:[%s5924_s10 + $0x30] sm:$0xff]  ;;  %v1867_v44 = vld [vmem:[%s5925_s11 + $0x20] sm:$0xff]  ;;  %v1858_v41 = vld [vmem:[%s5924_s10 + $0x18] sm:$0xff] }
 0x4f3   : > { %1902 = vadd.xlane.f32.xlu0 %v1901_v25  ;;  %1896 = vadd.xlane.f32.xlu1 %v1895_v26 }
 0x4f4   : > { %v5367_v31 = vadd.f32 %v1820_v29, %v1793_v24  ;;  %v1892_v40 = vsel %vm608_vm0, %v5370_v57, 0.0  ;;  %v1933_v47 = vsel %vm608_vm0, %v1913_v38, 0.0  ;;  %v1910_v5 = vmul.f32 %v5370_v57, %v5370_v57 }
 0x4f5   : > { %v1759_v39 = vpop.permute.xlu0 %1758 }
 0x4f6   : > { %v1792_v30 = vadd.f32 %v1759_v39, %v1555_v37  ;;  %v1889_v60 = vsel %vm608_vm0, %v5367_v31, 0.0  ;;  %v1909_v51 = vmul.f32 %v5367_v31, %v5367_v31  ;;  %v1924_v54 = vsel %vm608_vm0, %v1910_v5, 0.0  ;;  %v1878_v5 = vld [vmem:[%s5927_s13 + $0x18] sm:$0xff] }
 0x4f7   : > { %1899 = vadd.xlane.f32.xlu0 %v1898_v32  ;;  %1890 = vadd.xlane.f32.xlu1 %v1889_v60  ;;  %v1873_v32 = vld [vmem:[%s5926_s12 + $0x10] sm:$0xff] }
 0x4f8   : > { %v5376_v9 = vadd.f32 %v1815_v8, %v1792_v30  ;;  %v1921_v18 = vsel %vm608_vm0, %v1909_v51, 0.0  ;;  %v1872_v30 = vld [vmem:[%s5926_s12 + $0x8] sm:$0xff] }
 0x4f9   : > { %v1754_v63 = vpop.permute.xlu0 %1753 }
 0x4fa   : > { %v1791_v58 = vadd.f32 %v1754_v63, %v1552_v14  ;;  %v1886_v36 = vsel %vm608_vm0, %v5376_v9, 0.0  ;;  %v1908_v55 = vmul.f32 %v5376_v9, %v5376_v9  ;;  %v1874_v63 = vld [vmem:[%s5926_s12 + $0x18] sm:$0xff] }
 0x4fb   : > { %1893 = vadd.xlane.f32.xlu0 %v1892_v40 }
 0x4fc   : > { %v1918_v10 = vsel %vm608_vm0, %v1908_v55, 0.0  ;;  %v1880_v55 = vld [vmem:[%s5927_s13 + $0x28] sm:$0xff] }
 0x4fd   : > { %v1810_v33 = vpop.permute.xlu0 %1809 }
 0x4fe   : > { %v5381_v35 = vadd.f32 %v1810_v33, %v1791_v58 }
 0x4ff   : > { %1887 = vadd.xlane.f32.xlu0 %v1886_v36 }
 0x500   : > { %v1883_v0 = vsel %vm608_vm0, %v5381_v35, 0.0  ;;  %v1907_v17 = vmul.f32 %v5381_v35, %v5381_v35 }
 0x501   : > { %1884 = vadd.xlane.f32.xlu1 %v1883_v0  ;;  %v1875_v0 = vld [vmem:[%s5927_s13] sm:$0xff] }
 0x502   : > { %v1915_v3 = vsel %vm608_vm0, %v1907_v17, 0.0 }
 0x503   : > { %1937 = vadd.xlane.f32.xlu0 %v1936_v45 }
 0x505   : > { %1934 = vadd.xlane.f32.xlu1 %v1933_v47 }
 0x507   : > { %1931 = vadd.xlane.f32.xlu0 %v1930_v49  ;;  %v1877_v49 = vld [vmem:[%s5927_s13 + $0x10] sm:$0xff] }
 0x509   : > { %1928 = vadd.xlane.f32.xlu1 %v1927_v50  ;;  %v1879_v50 = vld [vmem:[%s5927_s13 + $0x20] sm:$0xff] }
 0x50b   : > { %1925 = vadd.xlane.f32.xlu0 %v1924_v54 }
 0x50d   : > { %1922 = vadd.xlane.f32.xlu1 %v1921_v18 }
 0x50f   : > { %1919 = vadd.xlane.f32.xlu0 %v1918_v10  ;;  %v1882_v10 = vld [vmem:[%s5927_s13 + $0x38] sm:$0xff] }
 0x511   : > { %1916 = vadd.xlane.f32.xlu1 %v1915_v3 }
 0x522   : > { %2515 = vperm.xlu1 %4362, %v1861_v6  }
 0x525   : > { %2520 = vperm.xlu0 %4363, %v1862_v15  }
 0x526   : > { %2563 = vperm.xlu1 %4362, %v1869_v19  }
 0x529   : > { %2568 = vperm.xlu0 %4363, %v1870_v42  }
 0x52a   : > { %2505 = vperm.xlu1 %4362, %v1859_v43  }
 0x52d   : > { %2510 = vperm.xlu0 %4363, %v1860_v11  }
 0x52e   : > { %2553 = vperm.xlu1 %4362, %v1867_v44  }
 0x531   : > { %2558 = vperm.xlu0 %4363, %v1868_v61  }
 0x532   : > { %2495 = vperm.xlu1 %4362, %v1857_v12  }
 0x535   : > { %2500 = vperm.xlu0 %4363, %v1858_v41  }
 0x578   : > { %v1906_v24 = vpop.xlane.xlu1 %1905 }
 0x579   : > { %4200 = vmatprep.subr.mxu1 %v1906_v24 }
 0x57a   : > { %4201 = vmatpush3.msra.mxu1 %v1906_v24 }
 0x57c   : > { %v1903_v25 = vpop.xlane.xlu0 %1902  ;;  %v1897_v26 = vpop.xlane.xlu1 %1896 }
 0x57d   : > { %4202 = vmatprep.subr.mxu1 %v1903_v25 }
 0x57e   : > { %4203 = vmatpush3.msra.mxu1 %v1903_v25 }
 0x580   : > { %v1900_v29 = vpop.xlane.xlu0 %1899  ;;  %v1891_v37 = vpop.xlane.xlu1 %1890 }
 0x581   : > { %4204 = vmatprep.subr.mxu1 %v1900_v29 }
 0x582   : > { %4205 = vmatpush3.msra.mxu1 %v1900_v29 }
 0x583   : > { %4206 = vmatprep.subr.mxu1 %v1897_v26 }
 0x584   : > { %v1894_v28 = vpop.xlane.xlu0 %1893  ;;  %4207 = vmatpush3.msra.mxu1 %v1897_v26 }
 0x585   : > { %4208 = vmatprep.subr.mxu1 %v1894_v28 }
 0x586   : > { %4209 = vmatpush3.msra.mxu1 %v1894_v28 }
 0x587   : > { %4210 = vmatprep.subr.mxu1 %v1891_v37 }
 0x588   : > { %4211 = vmatpush3.msra.mxu1 %v1891_v37  ;;  %v1888_v56 = vpop.xlane.xlu0 %1887 }
 0x589   : > { %4212 = vmatprep.subr.mxu1 %v1888_v56 }
 0x58a   : > { %4213 = vmatpush3.msra.mxu1 %v1888_v56  ;;  %v1885_v39 = vpop.xlane.xlu1 %1884 }
 0x58b   : > { %4214 = vmatprep.subr.mxu1 %v1885_v39 }
 0x58c   : > { %v1938_v60 = vpop.xlane.xlu0 %1937  ;;  %4215 = vmatpush3.msra.mxu1 %v1885_v39 }
 0x58d   : > { %4217 = vmatmul.mubr.msk.f32.vlgmr.msra.gmra.mxu1 %vm608_vm0, %v1872_v30  ;;  %4242 = vmatprep.subr.mxu0 %v1938_v60 }
 0x58e   : > { %4243 = vmatpush3.msra.mxu0 %v1938_v60  ;;  %v1935_v8 = vpop.xlane.xlu1 %1934  ;;  %4219 = vmatprep.mubr.msk.f32.mxu1 %vm608_vm0, %v1873_v32 }
 0x58f   : > { %4244 = vmatprep.subr.mxu0 %v1935_v8 }
 0x590   : > { %v1932_v14 = vpop.xlane.xlu0 %1931  ;;  %4245 = vmatpush3.msra.mxu0 %v1935_v8 }
 0x591   : > { %4220 = vmatmul.mubr.msk.f32.gmra.mxu1 %vm608_vm0, %v1874_v63  ;;  %4246 = vmatprep.subr.mxu0 %v1932_v14 }
 0x592   : > { %4247 = vmatpush3.msra.mxu0 %v1932_v14  ;;  %v1929_v40 = vpop.xlane.xlu1 %1928  ;;  %4230 = vmatprep.mubr.msk.f32.mxu1 %vm637_vm1, %v1875_v0 }
 0x593   : > { %4248 = vmatprep.subr.mxu0 %v1929_v40 }
 0x594   : > { %v1926_v58 = vpop.xlane.xlu0 %1925  ;;  %4249 = vmatpush3.msra.mxu0 %v1929_v40 }
 0x595   : > { %4250 = vmatprep.subr.mxu0 %v1926_v58 }
 0x596   : > { %4251 = vmatpush3.msra.mxu0 %v1926_v58  ;;  %v1923_v33 = vpop.xlane.xlu1 %1922 }
 0x597   : > { %4252 = vmatprep.subr.mxu0 %v1923_v33 }
 0x598   : > { %v1920_v36 = vpop.xlane.xlu0 %1919  ;;  %4253 = vmatpush3.msra.mxu0 %v1923_v33 }
 0x599   : > { %4254 = vmatprep.subr.mxu0 %v1920_v36 }
 0x59a   : > { %4255 = vmatpush3.msra.mxu0 %v1920_v36  ;;  %v1917_v2 = vpop.xlane.xlu1 %1916 }
 0x59b   : > { %4256 = vmatprep.subr.mxu0 %v1917_v2 }
 0x59c   : > { %4257 = vmatpush3.msra.mxu0 %v1917_v2 }
 0x59d   : > { %4259 = vmatmul.mubr.msk.f32.vlgmr.msra.gmra.mxu0 %vm608_vm0, %v1872_v30 }
 0x59e   : > { %4261 = vmatprep.mubr.msk.f32.mxu0 %vm608_vm0, %v1873_v32 }
 0x5a1   : > { %4262 = vmatmul.mubr.msk.f32.gmra.mxu0 %vm608_vm0, %v1874_v63 }
 0x64d   : > { %v4218_v38 = vpop.f32.mrf.mxu1 }
 0x64f   : > { %v2017_v45 = vpop.f32.mrf.mxu1 }
 0x651   : > { %v4221_v46 = vpop.f32.mrf.mxu1 }
 0x652   : > { %4222 = vmatprep.subr.mxu1 %v4221_v46 }
 0x653   : > { %v2027_v47 = vpop.f32.mrf.mxu1  ;;  %4223 = vmatpush3.msra.mxu1 %v4221_v46 }
 0x654   : > { %4224 = vmatprep.subr.mxu1 %v2027_v47 }
 0x655   : > { %4225 = vmatpush3.msra.mxu1 %v2027_v47 }
 0x656   : > { %4226 = vmatprep.subr.mxu1 %v4218_v38 }
 0x657   : > { %4227 = vmatpush3.msra.mxu1 %v4218_v38 }
 0x658   : > { %4228 = vmatprep.subr.mxu1 %v2017_v45 }
 0x659   : > { %4229 = vmatpush3.msra.mxu1 %v2017_v45 }
 0x65a   : > { %4231 = vmatmul.mubr.msk.f32.vlgmr.msra.gmra.mxu1 %vm637_vm1, %v1876_v48 }
 0x65b   : > { %4233 = vmatprep.mubr.msk.f32.mxu1 %vm637_vm1, %v1877_v49 }
 0x65d   : > { %v4260_v51 = vpop.f32.mrf.mxu0 }
 0x65e   : > { %4234 = vmatmul.mubr.msk.f32.gmra.mxu1 %vm637_vm1, %v1878_v5 }
 0x65f   : > { %v2231_v54 = vpop.f32.mrf.mxu0  ;;  %4236 = vmatprep.mubr.msk.f32.mxu1 %vm637_vm1, %v1879_v50 }
 0x661   : > { %v4263_v18 = vpop.f32.mrf.mxu0 }
 0x662   : > { %4237 = vmatmul.mubr.msk.f32.gmra.mxu1 %vm637_vm1, %v1880_v55  ;;  %4264 = vmatprep.subr.mxu1 %v4263_v18 }
 0x663   : > { %v2241_v17 = vpop.f32.mrf.mxu0  ;;  %4265 = vmatpush3.msra.mxu1 %v4263_v18  ;;  %4239 = vmatprep.mubr.msk.f32.mxu1 %vm637_vm1, %v1881_v16 }
 0x664   : > { %4266 = vmatprep.subr.mxu1 %v2241_v17 }
 0x665   : > { %4267 = vmatpush3.msra.mxu1 %v2241_v17 }
 0x666   : > { %4240 = vmatmul.mubr.msk.f32.gmra.mxu1 %vm637_vm1, %v1882_v10  ;;  %4268 = vmatprep.subr.mxu1 %v4260_v51 }
 0x667   : > { %4269 = vmatpush3.msra.mxu1 %v4260_v51  ;;  %4272 = vmatprep.mubr.msk.f32.mxu1 %vm637_vm1, %v1875_v0 }
 0x668   : > { %4270 = vmatprep.subr.mxu1 %v2231_v54 }
 0x669   : > { %4271 = vmatpush3.msra.mxu1 %v2231_v54 }
 0x66a   : > { %4273 = vmatmul.mubr.msk.f32.vlgmr.msra.gmra.mxu1 %vm637_vm1, %v1876_v48 }
 0x66b   : > { %4275 = vmatprep.mubr.msk.f32.mxu1 %vm637_vm1, %v1877_v49 }
 0x66e   : > { %4276 = vmatmul.mubr.msk.f32.gmra.mxu1 %vm637_vm1, %v1878_v5 }
 0x66f   : > { %4278 = vmatprep.mubr.msk.f32.mxu1 %vm637_vm1, %v1879_v50 }
 0x672   : > { %4279 = vmatmul.mubr.msk.f32.gmra.mxu1 %vm637_vm1, %v1880_v55 }
 0x673   : > { %4281 = vmatprep.mubr.msk.f32.mxu1 %vm637_vm1, %v1881_v16 }
 0x676   : > { %4282 = vmatmul.mubr.msk.f32.gmra.mxu1 %vm637_vm1, %v1882_v10 }
 0x71a   : > { %v4232_v3 = vpop.f32.mrf.mxu1 }
 0x71b   : > { %2378 = vperm.xlu0 %4363, %v4232_v3   ;;  %v2356_v8 = vmul.f32 %v4232_v3, %v4232_v3 }
 0x71c   : > { %v2126_v6 = vpop.f32.mrf.mxu1 }
 0x71d   : > { %2373 = vperm.xlu1 %4362, %v2126_v6   ;;  %v2355_v33 = vmul.f32 %v2126_v6, %v2126_v6 }
 0x71e   : > { %v4235_v15 = vpop.f32.mrf.mxu1 }
 0x71f   : > { %2388 = vperm.xlu0 %4363, %v4235_v15   ;;  %v2358_v41 = vmul.f32 %v4235_v15, %v4235_v15  ;;  %v1866_v15 = vld [vmem:[%s5925_s11 + $0x18] sm:$0xff] }
 0x720   : > { %v2136_v19 = vpop.f32.mrf.mxu1 }
 0x721   : > { %2383 = vperm.xlu1 %4362, %v2136_v19   ;;  %v2357_v25 = vmul.f32 %v2136_v19, %v2136_v19  ;;  %v1865_v19 = vld [vmem:[%s5925_s11 + $0x10] sm:$0xff] }
 0x722   : > { %v4238_v42 = vpop.f32.mrf.mxu1 }
 0x723   : > { %2398 = vperm.xlu0 %4363, %v4238_v42   ;;  %v2360_v28 = vmul.f32 %v4238_v42, %v4238_v42  ;;  %v1856_v42 = vld [vmem:[%s5924_s10 + $0x8] sm:$0xff] }
 0x724   : > { %v2146_v43 = vpop.f32.mrf.mxu1 }
 0x725   : > { %2393 = vperm.xlu1 %4362, %v2146_v43   ;;  %v2359_v30 = vmul.f32 %v2146_v43, %v2146_v43  ;;  %v1855_v43 = vld [vmem:[%s5924_s10] sm:$0xff] }
 0x726   : > { %v4241_v11 = vpop.f32.mrf.mxu1 }
 0x727   : > { %v2362_v14 = vmul.f32 %v4241_v11, %v4241_v11 }
 0x728   : > { %v2156_v44 = vpop.f32.mrf.mxu1 }
 0x729   : > { %2408 = vperm.xlu1 %4362, %v4241_v11   ;;  %2403 = vperm.xlu0 %4363, %v2156_v44   ;;  %v2361_v36 = vmul.f32 %v2156_v44, %v2156_v44  ;;  %v1864_v11 = vld [vmem:[%s5925_s11 + $0x8] sm:$0xff]  ;;  %v1863_v44 = vld [vmem:[%s5925_s11] sm:$0xff] }
 0x72a   : > { %v4274_v61 = vpop.f32.mrf.mxu1 }
 0x72b   : > { %v2364_v0 = vsub.f32 %v4274_v61, %v2356_v8  ;;  %v2516_v61 = vpop.permute.xlu1 %2515 }
 0x72c   : > { %v2316_v12 = vpop.f32.mrf.mxu1 }
 0x72d   : > { %v2363_v47 = vsub.f32 %v2316_v12, %v2355_v33  ;;  %v2420_v5 = vadd.f32 1e-05, %v2364_v0  ;;  %v2521_v12 = vpop.permute.xlu0 %2520 }
 0x72e   : > { %v4277_v24 = vpop.f32.mrf.mxu1 }
 0x72f   : > { %v2366_v26 = vsub.f32 %v4277_v24, %v2358_v41  ;;  %v2419_v51 = vadd.f32 1e-05, %v2363_v47  ;;  %v2564_v41 = vpop.permute.xlu1 %2563 }
 0x730   : > { %v2326_v29 = vpop.f32.mrf.mxu1 }
 0x731   : > { %v2422_v37 = vadd.f32 1e-05, %v2366_v26  ;;  %v2365_v56 = vsub.f32 %v2326_v29, %v2357_v25  ;;  %v2569_v24 = vpop.permute.xlu0 %2568 }
 0x732   : > { %v4280_v39 = vpop.f32.mrf.mxu1 }
 0x733   : > { %4692 = vrsqrt.f32 %v2422_v37  ;;  %v2421_v32 = vadd.f32 1e-05, %v2365_v56  ;;  %v2368_v60 = vsub.f32 %v4280_v39, %v2360_v28  ;;  %v2506_v25 = vpop.permute.xlu1 %2505 }
 0x734   : > { %v2336_v63 = vpop.f32.mrf.mxu1 }
 0x735   : > { %4694 = vrsqrt.f32 %v2421_v32  ;;  %v2424_v40 = vadd.f32 1e-05, %v2368_v60  ;;  %v2367_v58 = vsub.f32 %v2336_v63, %v2359_v30  ;;  %v2511_v26 = vpop.permute.xlu0 %2510 }
 0x736   : > { %v4283_v2 = vpop.f32.mrf.mxu1 }
 0x737   : > { %4696 = vrsqrt.f32 %v2424_v40  ;;  %v2423_v38 = vadd.f32 1e-05, %v2367_v58  ;;  %v2370_v45 = vsub.f32 %v4283_v2, %v2362_v14  ;;  %v2554_v29 = vpop.permute.xlu1 %2553 }
 0x738   : > { %v2346_v46 = vpop.f32.mrf.mxu1 }
 0x739   : > { %4698 = vrsqrt.f32 %v2423_v38  ;;  %v2426_v48 = vadd.f32 1e-05, %v2370_v45  ;;  %v2369_v49 = vsub.f32 %v2346_v46, %v2361_v36  ;;  %v2559_v28 = vpop.permute.xlu0 %2558 }
 0x73b   : > { %4700 = vrsqrt.f32 %v2426_v48  ;;  %v2425_v50 = vadd.f32 1e-05, %v2369_v49  ;;  %v2496_v37 = vpop.permute.xlu1 %2495 }
 0x73d   : > { %4702 = vrsqrt.f32 %v2425_v50  ;;  %v2501_v56 = vpop.permute.xlu0 %2500 }
 0x73e   : > { %4704 = vrsqrt.f32 %v2420_v5 }
 0x73f   : > { %4706 = vrsqrt.f32 %v2419_v51 }
 0x740   : > { %v4693_v54 = vpop.eup %4692 }
 0x741   : > { %2452 = vperm.xlu0 %4363, %v4693_v54  }
 0x742   : > { %v4695_v55 = vpop.eup %4694 }
 0x743   : > { %2447 = vperm.xlu1 %4362, %v4695_v55  }
 0x744   : > { %v4697_v16 = vpop.eup %4696 }
 0x745   : > { %2462 = vperm.xlu0 %4363, %v4697_v16  }
 0x746   : > { %v4699_v18 = vpop.eup %4698 }
 0x747   : > { %2457 = vperm.xlu1 %4362, %v4699_v18  }
 0x748   : > { %v4701_v17 = vpop.eup %4700 }
 0x749   : > { %2472 = vperm.xlu0 %4363, %v4701_v17  }
 0x74a   : > { %v4703_v10 = vpop.eup %4702 }
 0x74b   : > { %2467 = vperm.xlu1 %4362, %v4703_v10   ;;  %v4705_v3 = vpop.eup %4704 }
 0x74c   : > { %v4707_v6 = vpop.eup %4706 }
 0x74d   : > { %2442 = vperm.xlu0 %4363, %v4705_v3  }
 0x74f   : > { %2437 = vperm.xlu1 %4362, %v4707_v6  }
 0x751   : > { %2548 = vperm.xlu0 %4363, %v1866_v15  }
 0x753   : > { %2543 = vperm.xlu1 %4362, %v1865_v19  }
 0x755   : > { %2490 = vperm.xlu0 %4363, %v1856_v42  }
 0x757   : > { %2485 = vperm.xlu1 %4362, %v1855_v43  }
 0x759   : > { %2538 = vperm.xlu0 %4363, %v1864_v11  }
 0x75b   : > { %2533 = vperm.xlu1 %4362, %v1863_v44  }
 0x796   : > { %v2379_v39 = vpop.permute.xlu0 %2378 }
 0x798   : > { %v2374_v30 = vpop.permute.xlu1 %2373 }
 0x79a   : > { %v2389_v32 = vpop.permute.xlu0 %2388 }
 0x79b   : > { %v2414_v49 = vsub.f32 %v5370_v57, %v2389_v32 }
 0x79c   : > { %v2384_v60 = vpop.permute.xlu1 %2383 }
 0x79e   : > { %v2399_v8 = vpop.permute.xlu0 %2398 }
 0x79f   : > { %v2416_v36 = vsub.f32 %v5361_v22, %v2399_v8  ;;  %v2413_v22 = vsub.f32 %v5367_v31, %v2384_v60 }
 0x7a0   : > { %v2394_v63 = vpop.permute.xlu1 %2393 }
 0x7a1   : > { %v2415_v0 = vsub.f32 %v5353_v23, %v2394_v63 }
 0x7a4   : > { %v2404_v14 = vpop.permute.xlu0 %2403  ;;  %v2409_v40 = vpop.permute.xlu1 %2408 }
 0x7a5   : > { %v2418_v46 = vsub.f32 %v5350_v20, %v2409_v40  ;;  %v2417_v50 = vsub.f32 %v5357_v59, %v2404_v14 }
 0x7bc   : > { %v2453_v58 = vpop.permute.xlu0 %2452 }
 0x7bd   : > { %v2478_v16 = vmul.f32 %v2453_v58, %v2414_v49 }
 0x7be   : > { %v2448_v33 = vpop.permute.xlu1 %2447 }
 0x7bf   : > { %v2477_v3 = vmul.f32 %v2448_v33, %v2413_v22  ;;  %v2526_v31 = vmul.f32 %v2501_v56, %v2478_v16 }
 0x7c0   : > { %v2463_v2 = vpop.permute.xlu0 %2462 }
 0x7c1   : > { %v2480_v38 = vmul.f32 %v2463_v2, %v2416_v36 }
 0x7c2   : > { %v2458_v45 = vpop.permute.xlu1 %2457 }
 0x7c3   : > { %v2528_v47 = vmul.f32 %v2511_v26, %v2480_v38  ;;  %v2479_v48 = vmul.f32 %v2458_v45, %v2415_v0  ;;  %v2525_v26 = vmul.f32 %v2496_v37, %v2477_v3 }
 0x7c4   : > { %v2473_v5 = vpop.permute.xlu0 %2472 }
 0x7c5   : > { %v5524_v51 = vadd.f32 %v2559_v28, %v2528_v47  ;;  %v2527_v54 = vmul.f32 %v2506_v25, %v2479_v48  ;;  %v2482_v55 = vmul.f32 %v2473_v5, %v2418_v46 }
 0x7c6   : > { %v2468_v18 = vpop.permute.xlu1 %2467 }
 0x7c7   : > { %v3709_v23 = vmul.f32 -1.442695, %v5524_v51  ;;  %v5528_v17 = vadd.f32 %v2554_v29, %v2527_v54  ;;  %v2530_v20 = vmul.f32 %v2521_v12, %v2482_v55  ;;  %v2481_v10 = vmul.f32 %v2468_v18, %v2417_v50 }
 0x7c8   : > { %v2443_v6 = vpop.permute.xlu0 %2442  ;;  %v2412_v29 = vsub.f32 %v5376_v9, %v2379_v39 }
 0x7c9   : > { %4708 = vpow2.f32 %v3709_v23  ;;  %v3708_v57 = vmul.f32 -1.442695, %v5528_v17  ;;  %v2578_v59 = vadd.f32 %v2569_v24, %v2530_v20  ;;  %v2529_v15 = vmul.f32 %v2516_v61, %v2481_v10 }
 0x7ca   : > { %v2438_v19 = vpop.permute.xlu1 %2437  ;;  %v2411_v61 = vsub.f32 %v5381_v35, %v2374_v30  ;;  %v2476_v60 = vmul.f32 %v2443_v6, %v2412_v29 }
 0x7cb   : > { %4710 = vpow2.f32 %v3708_v57  ;;  %v3711_v42 = vmul.f32 -1.442695, %v2578_v59  ;;  %v2577_v43 = vadd.f32 %v2564_v41, %v2529_v15 }
 0x7cc   : > { %v2549_v11 = vpop.permute.xlu0 %2548  ;;  %v2475_v8 = vmul.f32 %v2438_v19, %v2411_v61 }
 0x7cd   : > { %4712 = vpow2.f32 %v3711_v42  ;;  %v3710_v44 = vmul.f32 -1.442695, %v2577_v43  ;;  %v5531_v25 = vadd.f32 %v2549_v11, %v2526_v31 }
 0x7ce   : > { %v2544_v12 = vpop.permute.xlu1 %2543 }
 0x7cf   : > { %4714 = vpow2.f32 %v3710_v44  ;;  %v3707_v28 = vmul.f32 -1.442695, %v5531_v25  ;;  %v2573_v32 = vadd.f32 %v2544_v12, %v2525_v26 }
 0x7d0   : > { %v2491_v24 = vpop.permute.xlu0 %2490 }
 0x7d1   : > { %4716 = vpow2.f32 %v3707_v28  ;;  %v3706_v41 = vmul.f32 -1.442695, %v2573_v32  ;;  %v2524_v63 = vmul.f32 %v2491_v24, %v2476_v60 }
 0x7d2   : > { %v2486_v56 = vpop.permute.xlu1 %2485 }
 0x7d3   : > { %4718 = vpow2.f32 %v3706_v41  ;;  %v2523_v40 = vmul.f32 %v2486_v56, %v2475_v8 }
 0x7d4   : > { %v2539_v14 = vpop.permute.xlu0 %2538 }
 0x7d5   : > { %v5536_v37 = vadd.f32 %v2539_v14, %v2524_v63 }
 0x7d6   : > { %v4709_v58 = vpop.eup %4708  ;;  %v2534_v9 = vpop.permute.xlu1 %2533 }
 0x7d7   : > { %v2608_v39 = vadd.f32 1.0, %v4709_v58  ;;  %v3705_v33 = vmul.f32 -1.442695, %v5536_v37  ;;  %v2571_v36 = vadd.f32 %v2534_v9, %v2523_v40 }
 0x7d8   : > { %v4711_v2 = vpop.eup %4710 }
 0x7d9   : > { %4720 = vrcp.f32 %v2608_v39  ;;  %v2607_v35 = vadd.f32 1.0, %v4711_v2  ;;  %v3704_v30 = vmul.f32 -1.442695, %v2571_v36 }
 0x7da   : > { %v4713_v0 = vpop.eup %4712  ;;  %4722 = vpow2.f32 %v3705_v33 }
 0x7db   : > { %4724 = vrcp.f32 %v2607_v35  ;;  %v2610_v38 = vadd.f32 1.0, %v4713_v0 }
 0x7dc   : > { %v4715_v45 = vpop.eup %4714  ;;  %4726 = vpow2.f32 %v3704_v30 }
 0x7dd   : > { %4728 = vrcp.f32 %v2610_v38  ;;  %v2609_v46 = vadd.f32 1.0, %v4715_v45 }
 0x7de   : > { %v4717_v47 = vpop.eup %4716 }
 0x7df   : > { %4730 = vrcp.f32 %v2609_v46  ;;  %v2606_v48 = vadd.f32 1.0, %v4717_v47 }
 0x7e0   : > { %v4719_v49 = vpop.eup %4718 }
 0x7e1   : > { %4732 = vrcp.f32 %v2606_v48  ;;  %v2605_v5 = vadd.f32 1.0, %v4719_v49  ;;  %v2992_v49 = vld [vmem:[%s5929_s15 + $0x8] sm:$0xff] }
 0x7e3   : > { %4734 = vrcp.f32 %v2605_v5  ;;  %v2991_v5 = vld [vmem:[%s5929_s15] sm:$0xff] }
 0x7e6   : > { %v4721_v50 = vpop.eup %4720 }
 0x7e7   : > { %v4723_v54 = vpop.eup %4722  ;;  %v5543_v20 = vmul.f32 %v4721_v50, %v5524_v51  ;;  %v2994_v50 = vld [vmem:[%s5929_s15 + $0x18] sm:$0xff] }
 0x7e8   : > { %v4725_v55 = vpop.eup %4724  ;;  %v2604_v22 = vadd.f32 1.0, %v4723_v54  ;;  %v2993_v54 = vld [vmem:[%s5929_s15 + $0x10] sm:$0xff] }
 0x7e9   : > { %v4727_v16 = vpop.eup %4726  ;;  %v5540_v18 = vmul.f32 %v4725_v55, %v5528_v17  ;;  %v2648_v33 = vmul.f32 %v5072_v62, %v5543_v20  ;;  %v2996_v55 = vld [vmem:[%s5929_s15 + $0x28] sm:$0xff] }
 0x7ea   : > { %v4729_v23 = vpop.eup %4728  ;;  %v2603_v10 = vadd.f32 1.0, %v4727_v16  ;;  %4736 = vrcp.f32 %v2604_v22  ;;  %v2995_v22 = vld [vmem:[%s5929_s15 + $0x20] sm:$0xff]  ;;  %v2998_v16 = vld [vmem:[%s5929_s15 + $0x38] sm:$0xff] }
 0x7eb   : > { %v5545_v3 = vmul.f32 %v4729_v23, %v2578_v59  ;;  %v2973_v57 = vpack.c.bf16 %v5543_v20, %v5540_v18  ;;  %v4464_v40 = vpack.i.bf16 %v5543_v20, %v5540_v18  ;;  %v2647_v9 = vmul.f32 %v5072_v62, %v5540_v18  ;;  %v2997_v23 = vld [vmem:[%s5929_s15 + $0x30] sm:$0xff] }
 0x7ec   : > { %v4731_v6 = vpop.eup %4730  ;;  %4738 = vrcp.f32 %v2603_v10  ;;  %v2639_v39 = vmul.f32 %v5093_v13, %v5540_v18 }
 0x7ed   : > { %v5549_v15 = vmul.f32 %v4731_v6, %v2577_v43  ;;  %v2642_v51 = vmul.f32 %v5093_v13, %v5545_v3  ;;  %v2650_v11 = vmul.f32 %v5072_v62, %v5545_v3  ;;  %v4479_v2 = vpack.i.bf16 %v2648_v33, %v2647_v9 }
 0x7ee   : > { %v4733_v19 = vpop.eup %4732 }
 0x7ef   : > { %v4484_v17 = vpack.i.bf16 %v5545_v3, %v5549_v15  ;;  %v2641_v42 = vmul.f32 %v5093_v13, %v5549_v15  ;;  %v2649_v31 = vmul.f32 %v5072_v62, %v5549_v15  ;;  %v2974_v43 = vpack.c.bf16 %v5545_v3, %v5549_v15 }
 0x7f0   : > { %v4735_v59 = vpop.eup %4734  ;;  %v5564_v44 = vmul.f32 %v4733_v19, %v5531_v25 }
 0x7f1   : > { %v5566_v26 = vmul.f32 %v4735_v59, %v2573_v32  ;;  %v4494_v12 = vpack.i.bf16 %v2642_v51, %v2641_v42  ;;  %v4514_v29 = vpack.i.bf16 %v2650_v11, %v2649_v31 }
 0x7f2   : > { %v2646_v25 = vmul.f32 %v5072_v62, %v5564_v44  ;;  %v2638_v32 = vmul.f32 %v5093_v13, %v5564_v44 }
 0x7f3   : > { %v4449_v28 = vpack.i.bf16 %v5564_v44, %v5566_v26  ;;  %v2645_v24 = vmul.f32 %v5072_v62, %v5566_v26  ;;  %v2637_v61 = vmul.f32 %v5093_v13, %v5566_v26  ;;  %v2972_v60 = vpack.c.bf16 %v5564_v44, %v5566_v26  ;;  %v4623_v44 = vld [vmem:[%s5928_s14 + $0x8] ss:$20 sps:$4 sm:$0xff]   ;;  %v4626_v26 = vld [vmem:[%s5928_s14 + $0x2c] ss:$20 sps:$4 sm:$0xff]  }
 0x7f5   : > { %4450 = vrot.lane.b32.xlu1 %v4449_v28, %s5986_s19  ;;  %4445 = vrot.lane.b32.xlu0 %v4449_v28, %s5987_s23  ;;  %v4459_v41 = vpack.i.bf16 %v2646_v25, %v2645_v24  ;;  %v4454_v56 = vpack.i.bf16 %v2638_v32, %v2637_v61 }
 0x7f7   : > { %v4737_v8 = vpop.eup %4736 }
 0x7f8   : > { %v5589_v58 = vmul.f32 %v4737_v8, %v5536_v37 }
 0x7f9   : > { %v4739_v63 = vpop.eup %4738  ;;  %4460 = vrot.lane.b32.xlu0 %v4459_v41, %s5988_s29  ;;  %4455 = vrot.lane.b32.xlu1 %v4454_v56, %s5989_s2 }
 0x7fa   : > { %v5584_v14 = vmul.f32 %v4739_v63, %v2571_v36  ;;  %v2640_v36 = vmul.f32 %v5093_v13, %v5543_v20  ;;  %v2636_v38 = vmul.f32 %v5093_v13, %v5589_v58  ;;  %v2644_v47 = vmul.f32 %v5072_v62, %v5589_v58 }
 0x7fc   : > { %v2971_v37 = vpack.c.bf16 %v5589_v58, %v5584_v14  ;;  %v4474_v35 = vpack.i.bf16 %v2640_v36, %v2639_v39  ;;  %v4504_v30 = vpack.i.bf16 %v5589_v58, %v5584_v14  ;;  %v2635_v0 = vmul.f32 %v5093_v13, %v5584_v14  ;;  %v4625_v13 = vld [vmem:[%s5928_s14 + $0xc] ss:$20 sps:$4 sm:$0xff]  }
 0x7fd   : > { %4465 = vrot.lane.b32.xlu0 %v4464_v40, %s5987_s23  ;;  %4470 = vrot.lane.b32.xlu1 %v4464_v40, %s5986_s19  ;;  %v2643_v46 = vmul.f32 %v5072_v62, %v5584_v14  ;;  %v4622_v62 = vld [vmem:[%s5928_s14 + $0x4] ss:$20 sps:$4 sm:$0xff]   ;;  %v4742_v14 = vld [vmem:[%s4966_s18 + $0x8] sm:$0xff] }
 0x7fe   : > { %v4499_v45 = vpack.i.bf16 %v2636_v38, %v2635_v0  ;;  %3183 = vmatprep.mubr.bf16.mxu0 %v4622_v62  ;;  %3248 = vmatprep.mubr.bf16.mxu1 %v4625_v13  ;;  %v4743_v58 = vld [vmem:[%s4966_s18] sm:$0xff] }
 0x7ff   : > { %v4519_v48 = vpack.i.bf16 %v2644_v47, %v2643_v46 }
 0x801   : > { %4480 = vrot.lane.b32.xlu0 %v4479_v2, %s5988_s29  ;;  %4475 = vrot.lane.b32.xlu1 %v4474_v35, %s5989_s2 }
 0x805   : > { %4485 = vrot.lane.b32.xlu0 %v4484_v17, %s5987_s23  ;;  %4490 = vrot.lane.b32.xlu1 %v4484_v17, %s5986_s19 }
 0x809   : > { %4495 = vrot.lane.b32.xlu1 %v4494_v12, %s5989_s2  ;;  %4505 = vrot.lane.b32.xlu0 %v4504_v30, %s5987_s23 }
 0x80d   : > { %4515 = vrot.lane.b32.xlu0 %v4514_v29, %s5988_s29  ;;  %4500 = vrot.lane.b32.xlu1 %v4499_v45, %s5989_s2  ;;  %s554_s2 = sand.u32 1, %s4796_s25  }
 0x811   : > { %4520 = vrot.lane.b32.xlu0 %v4519_v48, %s5988_s29  ;;  %4510 = vrot.lane.b32.xlu1 %v4504_v30, %s5986_s19 }
 0x815   : > { %4525 = vrot.lane.b32.xlu0 %v4479_v2, %s5990_s4  ;;  %4530 = vrot.lane.b32.xlu1 %v4474_v35, %s5991_s22 }
 0x819   : > { %4540 = vrot.lane.b32.xlu0 %v4494_v12, %s5991_s22  ;;  %4535 = vrot.lane.b32.xlu1 %v4514_v29, %s5990_s4 }
 0x81d   : > { %4545 = vrot.lane.b32.xlu0 %v4474_v35, %s5992_s26  ;;  %4550 = vrot.lane.b32.xlu1 %v4494_v12, %s5992_s26 }
 0x821   : > { %4560 = vrot.lane.b32.xlu0 %v4454_v56, %s5991_s22  ;;  %4555 = vrot.lane.b32.xlu1 %v4459_v41, %s5990_s4 }
 0x825   : > { %4570 = vrot.lane.b32.xlu0 %v4519_v48, %s5990_s4  ;;  %4565 = vrot.lane.b32.xlu1 %v4454_v56, %s5992_s26  ;;  %s3561_s4 = sshll.u32 %s554_s2, 6 }
 0x829   : > { %4580 = vrot.lane.b32.xlu0 %v4499_v45, %s5992_s26  ;;  %4575 = vrot.lane.b32.xlu1 %v4499_v45, %s5991_s22  ;;  %s5842_s26 = scalar_lea.vmem [#allocation2], %s3561_s4 }
 0x82a   : > { %s3483_s22 = sshll.u32 %s5842_s26, 4  ;;  %s5867_s22 = int_to_ptr.vmem [resolvable:$true] %s3483_s22 }
 0x82b   : > { %s4744_s21 = scalar_lea.vmem %s5867_s22, 1024 }
 0x82c   : > { %p4745_p11 = scmp.ne.s32.totalorder %s5867_s22, %s4744_s21 }
 0x82d   : > { %4590 = vrot.lane.b32.xlu0 %v4479_v2, %s5993_s30  ;;  %4585 = vrot.lane.b32.xlu1 %v4514_v29, %s5993_s30 }
 0x82e   : > { %p4746_p12 = pnand %p4745_p11, %p4946_p5 }
 0x830   : > { %p4747_p13 = pneg %p4746_p12 }
 0x831   : > { %4600 = vrot.lane.b32.xlu0 %v4519_v48, %s5993_s30  ;;  %4595 = vrot.lane.b32.xlu1 %v4459_v41, %s5993_s30  ;;  %s4816_s30 = smov [#allocation2]  }
 0x832   : > { %s4748_s19 = sshll.u32 %s4816_s30, 4  ;;  %s4749_s19 = int_to_ptr.vmem [resolvable:$false] %s4748_s19 }
 0x833   : > { %s4750_s29 = scalar_lea.vmem %s4749_s19, 2048  ;;  %p4751_p0 = scmp.lt.s32.totalorder %s5867_s22, %s4749_s19 }
 0x834   : > { %p4752_p1 = scmp.lt.s32.totalorder %s4750_s29, %s4744_s21 }
 0x835   : > { %3006 = vperm.xlu0 %4363, %v2992_v49   ;;  %3001 = vperm.xlu1 %4362, %v2991_v5  }
 0x836   : > { %p4753_p2 = por %p4752_p1, %p4751_p0 }
 0x838   : > { %p4754_p3 = pnand %p4753_p2, %p4747_p13 }
 0x839   : > { %3016 = vperm.xlu0 %4363, %v2994_v50   ;;  %3011 = vperm.xlu1 %4362, %v2993_v54  }
 0x83d   : > { %3026 = vperm.xlu0 %4363, %v2996_v55   ;;  %3021 = vperm.xlu1 %4362, %v2995_v22  }
 0x841   : > { %3036 = vperm.xlu0 %4363, %v2998_v16   ;;  %3031 = vperm.xlu1 %4362, %v2997_v23  }
 0x867   : > { %v4446_v10 = vpop.permute.xlu0 %4445  ;;  %v4451_v6 = vpop.permute.xlu1 %4450 }
 0x868   : > { %v4448_v62 = vunpack.i.h.bf16 %v4446_v10  ;;  %v4447_v13 = vunpack.i.l.bf16 %v4446_v10  ;;  %v4453_v49 = vunpack.i.h.bf16 %v4451_v6  ;;  %v4452_v5 = vunpack.i.l.bf16 %v4451_v6 }
 0x86a   : > { %v3745_v10 = vpack.c.bf16 %v4448_v62, %v4447_v13  ;;  %v3831_v6 = vpack.c.bf16 %v4453_v49, %v4452_v5 }
 0x86b   : > { %v5669_v19 = vpop.permute.xlu0 %4460  ;;  %v4456_v17 = vpop.permute.xlu1 %4455 }
 0x86c   : > { %v4458_v9 = vunpack.i.h.bf16 %v4456_v17  ;;  %v4457_v45 = vunpack.i.l.bf16 %v4456_v17 }
 0x86f   : > { %v4466_v42 = vpop.permute.xlu0 %4465  ;;  %v4471_v51 = vpop.permute.xlu1 %4470 }
 0x870   : > { %v4468_v39 = vunpack.i.h.bf16 %v4466_v42  ;;  %v4467_v36 = vunpack.i.l.bf16 %v4466_v42  ;;  %v4473_v2 = vunpack.i.h.bf16 %v4471_v51  ;;  %v4472_v35 = vunpack.i.l.bf16 %v4471_v51 }
 0x871   : > { %v3785_v42 = vpack.c.bf16 %v4458_v9, %v4457_v45 }
 0x872   : > { %v3740_v22 = vpack.c.bf16 %v4468_v39, %v4467_v36  ;;  %v3828_v16 = vpack.c.bf16 %v4473_v2, %v4472_v35 }
 0x873   : > { %v4481_v59 = vpop.permute.xlu0 %4480  ;;  %v4476_v31 = vpop.permute.xlu1 %4475 }
 0x874   : > { %v4478_v56 = vunpack.i.h.bf16 %v4476_v31  ;;  %v4477_v8 = vunpack.i.l.bf16 %v4476_v31  ;;  %v4483_v50 = vunpack.i.h.bf16 %v4481_v59  ;;  %v4482_v54 = vunpack.i.l.bf16 %v4481_v59 }
 0x875   : > { %v4463_v59 = vunpack.i.h.bf16 %v5669_v19 }
 0x876   : > { %v3780_v46 = vpack.c.bf16 %v4478_v56, %v4477_v8 }
 0x877   : > { %v4486_v11 = vpop.permute.xlu0 %4485  ;;  %v4491_v12 = vpop.permute.xlu1 %4490 }
 0x878   : > { %v4493_v29 = vunpack.i.h.bf16 %v4491_v12  ;;  %v4492_v28 = vunpack.i.l.bf16 %v4491_v12  ;;  %v4488_v61 = vunpack.i.h.bf16 %v4486_v11  ;;  %v4487_v25 = vunpack.i.l.bf16 %v4486_v11 }
 0x879   : > { %v4462_v11 = vunpack.i.l.bf16 %v5669_v19  ;;  %v3816_v12 = vpack.c.bf16 %v4483_v50, %v4482_v54 }
 0x87a   : > { %v3825_v24 = vpack.c.bf16 %v4493_v29, %v4492_v28  ;;  %v3735_v30 = vpack.c.bf16 %v4488_v61, %v4487_v25 }
 0x87b   : > { %v4506_v32 = vpop.permute.xlu0 %4505  ;;  %v4496_v41 = vpop.permute.xlu1 %4495  ;;  %v3819_v19 = vpack.c.bf16 %v4463_v59, %v4462_v11 }
 0x87c   : > { %v4498_v63 = vunpack.i.h.bf16 %v4496_v41  ;;  %v4497_v40 = vunpack.i.l.bf16 %v4496_v41  ;;  %4058 = vmatprep.subr.msk.bf16.mxu1 %vm5185_vm8, %v3825_v24  ;;  %v4508_v29 = vunpack.i.h.bf16 %v4506_v32  ;;  %v4507_v28 = vunpack.i.l.bf16 %v4506_v32 }
 0x87e   : > { %v3775_v33 = vpack.c.bf16 %v4498_v63, %v4497_v40  ;;  %v3750_v32 = vpack.c.bf16 %v4508_v29, %v4507_v28 }
 0x87f   : > { %v4516_v0 = vpop.permute.xlu0 %4515  ;;  %v4501_v38 = vpop.permute.xlu1 %4500 }
 0x880   : > { %v4518_v47 = vunpack.i.h.bf16 %v4516_v0  ;;  %v4517_v48 = vunpack.i.l.bf16 %v4516_v0  ;;  %4018 = vmatprep.subr.msk.bf16.mxu0 %vm5198_vm10, %v3775_v33  ;;  %v4503_v51 = vunpack.i.h.bf16 %v4501_v38  ;;  %v4502_v31 = vunpack.i.l.bf16 %v4501_v38 }
 0x881   : > { %4019 = vmatpush3.bf16.msk.msra.mxu0 %vm5246_vm7, %v3735_v30 }
 0x882   : > { %v3813_v55 = vpack.c.bf16 %v4518_v47, %v4517_v48  ;;  %4020 = vmatprep.subr.msk.bf16.mxu0 %vm5198_vm10, %v3780_v46  ;;  %v3790_v56 = vpack.c.bf16 %v4503_v51, %v4502_v31 }
 0x883   : > { %v4521_v23 = vpop.permute.xlu0 %4520  ;;  %v4511_v17 = vpop.permute.xlu1 %4510 }
 0x884   : > { %4059 = vmatpush3.bf16.msk.msra.mxu1 %vm5237_vm4, %v3813_v55  ;;  %v4513_v24 = vunpack.i.h.bf16 %v4511_v17  ;;  %v4512_v61 = vunpack.i.l.bf16 %v4511_v17  ;;  %v4523_v8 = vunpack.i.h.bf16 %v4521_v23  ;;  %v4522_v63 = vunpack.i.l.bf16 %v4521_v23 }
 0x885   : > { %4021 = vmatpush3.bf16.msk.msra.mxu0 %vm5246_vm7, %v3740_v22  ;;  %4060 = vmatprep.subr.msk.bf16.mxu1 %vm5185_vm8, %v3828_v16 }
 0x886   : > { %4022 = vmatprep.subr.msk.bf16.mxu0 %vm5198_vm10, %v3785_v42  ;;  %v3834_v40 = vpack.c.bf16 %v4513_v24, %v4512_v61  ;;  %v3822_v21 = vpack.c.bf16 %v4523_v8, %v4522_v63 }
 0x887   : > { %v4526_v25 = vpop.permute.xlu0 %4525  ;;  %v4531_v41 = vpop.permute.xlu1 %4530 }
 0x888   : > { %4061 = vmatpush3.bf16.msk.msra.mxu1 %vm5237_vm4, %v3816_v12  ;;  %v4528_v9 = vunpack.i.h.bf16 %v4526_v25  ;;  %v4527_v39 = vunpack.i.l.bf16 %v4526_v25  ;;  %v4533_v47 = vunpack.i.h.bf16 %v4531_v41  ;;  %v4532_v48 = vunpack.i.l.bf16 %v4531_v41 }
 0x889   : > { %4023 = vmatpush3.bf16.msk.msra.mxu0 %vm5246_vm7, %v3745_v10  ;;  %4062 = vmatprep.subr.msk.bf16.mxu1 %vm5185_vm8, %v3831_v6 }
 0x88a   : > { %4024 = vmatprep.subr.msk.bf16.mxu0 %vm5198_vm10, %v3790_v56  ;;  %v3800_v46 = vpack.c.bf16 %v4528_v9, %v4527_v39  ;;  %v3760_v7 = vpack.c.bf16 %v4533_v47, %v4532_v48  ;;  %v4741_v56 = vld [vmem:[%s4966_s18 + $0x10] sm:$0xff] }
 0x88b   : > { %v4541_v33 = vpop.permute.xlu0 %4540  ;;  %v4536_v36 = vpop.permute.xlu1 %4535  ;;  %v4635_v47 = vld [vmem:[%s5928_s14 + $0x5c] ss:$20 sps:$4 sm:$0xff]  }
 0x88c   : > { %v4543_v2 = vunpack.i.h.bf16 %v4541_v33  ;;  %v4542_v35 = vunpack.i.l.bf16 %v4541_v33  ;;  %v4538_v30 = vunpack.i.h.bf16 %v4536_v36  ;;  %v4537_v0 = vunpack.i.l.bf16 %v4536_v36  ;;  %4063 = vmatpush3.bf16.msk.msra.mxu1 %vm5237_vm4, %v3819_v19 }
 0x88d   : > { %4025 = vmatpush3.bf16.msk.msra.mxu0 %vm5246_vm7, %v3750_v32  ;;  %4064 = vmatprep.subr.msk.bf16.mxu1 %vm5185_vm8, %v3834_v40  ;;  %v4620_v32 = vld [vmem:[%s5928_s14] ss:$20 sps:$4 sm:$0xff]  }
 0x88e   : > { %v3755_v38 = vpack.c.bf16 %v4543_v2, %v4542_v35  ;;  %v3795_v45 = vpack.c.bf16 %v4538_v30, %v4537_v0  ;;  %v4628_v30 = vld [vmem:[%s5928_s14 + $0x28] ss:$20 sps:$4 sm:$0xff]  }
 0x88f   : > { %v4546_v62 = vpop.permute.xlu0 %4545  ;;  %v4551_v13 = vpop.permute.xlu1 %4550 }
 0x890   : > { %v4548_v49 = vunpack.i.h.bf16 %v4546_v62  ;;  %v4547_v5 = vunpack.i.l.bf16 %v4546_v62  ;;  %v4553_v50 = vunpack.i.h.bf16 %v4551_v13  ;;  %v4552_v54 = vunpack.i.l.bf16 %v4551_v13  ;;  %4026 = vmatprep.subr.msk.bf16.mxu0 %vm5225_vm15, %v3795_v45  ;;  %4065 = vmatpush3.bf16.msk.msra.mxu1 %vm5237_vm4, %v3822_v21  ;;  %v4631_v45 = vld [vmem:[%s5928_s14 + $0x30] ss:$20 sps:$4 sm:$0xff]   ;;  %v4637_v13 = vld [vmem:[%s5928_s14 + $0x58] ss:$20 sps:$4 sm:$0xff]  }
 0x891   : > { %4027 = vmatpush3.bf16.msk.msra.mxu0 %vm5275_vm12, %v3755_v38  ;;  %v4634_v62 = vld [vmem:[%s5928_s14 + $0x50] ss:$20 sps:$4 sm:$0xff]  }
 0x892   : > { %v3837_v4 = vpack.c.bf16 %v4553_v50, %v4552_v54  ;;  %4028 = vmatprep.subr.msk.bf16.mxu0 %vm5225_vm15, %v3800_v46  ;;  %v3840_v55 = vpack.c.bf16 %v4548_v49, %v4547_v5  ;;  %v4632_v46 = vld [vmem:[%s5928_s14 + $0x54] ss:$20 sps:$4 sm:$0xff]   ;;  %v4638_v49 = vld [vmem:[%s5928_s14 + $0x7c] ss:$20 sps:$4 sm:$0xff]   ;;  %v4641_v5 = vld [vmem:[%s5928_s14 + $0x84] ss:$20 sps:$4 sm:$0xff]  }
 0x893   : > { %v4561_v22 = vpop.permute.xlu0 %4560  ;;  %v4556_v16 = vpop.permute.xlu1 %4555  ;;  %v4640_v50 = vld [vmem:[%s5928_s14 + $0x78] ss:$20 sps:$4 sm:$0xff]   ;;  %v4643_v54 = vld [vmem:[%s5928_s14 + $0x80] ss:$20 sps:$4 sm:$0xff]  }
 0x894   : > { %v4563_v23 = vunpack.i.h.bf16 %v4561_v22  ;;  %v4562_v17 = vunpack.i.l.bf16 %v4561_v22  ;;  %v4558_v42 = vunpack.i.h.bf16 %v4556_v16  ;;  %v4557_v51 = vunpack.i.l.bf16 %v4556_v16  ;;  %4066 = vmatprep.subr.msk.bf16.mxu1 %vm5211_vm13, %v3837_v4  ;;  %v4646_v4 = vld [vmem:[%s5930_s16] sm:$0xff]   ;;  %v4650_v16 = vld [vmem:[%s5930_s16 + $0x10] sm:$0xff]  }
 0x895   : > { %4029 = vmatpush3.bf16.msk.msra.mxu0 %vm5275_vm12, %v3760_v7  ;;  %4067 = vmatpush3.bf16.msra.mxu1 %v2974_v43  ;;  %v4645_v7 = vld [vmem:[%s5928_s14 + $0x38] ss:$20 sps:$4 sm:$0xff]   ;;  %v4648_v22 = vld [vmem:[%s5928_s14 + $0x60] ss:$20 sps:$4 sm:$0xff]  }
 0x896   : > { %v3765_v53 = vpack.c.bf16 %v4563_v23, %v4562_v17  ;;  %v3805_v31 = vpack.c.bf16 %v4558_v42, %v4557_v51  ;;  %4068 = vmatprep.subr.msk.bf16.mxu1 %vm5211_vm13, %v3840_v55  ;;  %v4647_v55 = vld [vmem:[%s5930_s16 + $0x8] sm:$0xff]   ;;  %v4651_v17 = vld [vmem:[%s5930_s16 + $0x18] sm:$0xff]  }
 0x897   : > { %v4571_v10 = vpop.permute.xlu0 %4570  ;;  %v4566_v6 = vpop.permute.xlu1 %4565  ;;  %v4649_v23 = vld [vmem:[%s5928_s14 + $0x88] ss:$20 sps:$4 sm:$0xff]  }
 0x898   : > { %v4573_v59 = vunpack.i.h.bf16 %v4571_v10  ;;  %v4572_v11 = vunpack.i.l.bf16 %v4571_v10  ;;  %v4568_v12 = vunpack.i.h.bf16 %v4566_v6  ;;  %v4567_v29 = vunpack.i.l.bf16 %v4566_v6  ;;  %4030 = vmatprep.subr.msk.bf16.mxu0 %vm5225_vm15, %v3805_v31 }
 0x899   : > { %4031 = vmatpush3.bf16.msk.msra.mxu0 %vm5275_vm12, %v3765_v53  ;;  %4069 = vmatpush3.bf16.msra.mxu1 %v2973_v57  ;;  %v4740_v57 = vld [vmem:[%s4966_s18 + $0x18] sm:$0xff]  ;;  %s3879_s18 = sshll.u32 %s4929_s28, 10  ;;  %s5873_s28 = scalar_lea.sflag [#allocation3], %s554_s2 }
 0x89a   : > { %v3810_v3 = vpack.c.bf16 %v4573_v59, %v4572_v11  ;;  %v3843_v15 = vpack.c.bf16 %v4568_v12, %v4567_v29  ;;  %v3355_v19 = vpack.c.bf16 %v4740_v57, %v4741_v56  ;;  %s5863_s5 = scalar_lea.hbm %s5931_s17, %s3879_s18 }
 0x89b   : > { %v4581_v43 = vpop.permute.xlu0 %4580  ;;  %v4576_v28 = vpop.permute.xlu1 %4575 }
 0x89c   : > { %v4583_v24 = vunpack.i.h.bf16 %v4581_v43  ;;  %v4582_v61 = vunpack.i.l.bf16 %v4581_v43  ;;  %v4578_v25 = vunpack.i.h.bf16 %v4576_v28  ;;  %v4577_v41 = vunpack.i.l.bf16 %v4576_v28  ;;  %4032 = vmatprep.subr.msk.bf16.mxu0 %vm5225_vm15, %v3810_v3  ;;  %4070 = vmatprep.subr.msk.bf16.mxu1 %vm5211_vm13, %v3843_v15 }
 0x89d   : > { %4071 = vmatpush3.bf16.msra.mxu1 %v2972_v60 }
 0x89e   : > { %v3846_v18 = vpack.c.bf16 %v4583_v24, %v4582_v61  ;;  %v3770_v20 = vpack.c.bf16 %v4578_v25, %v4577_v41 }
 0x89f   : > { %v4591_v8 = vpop.permute.xlu0 %4590  ;;  %v4586_v63 = vpop.permute.xlu1 %4585 }
 0x8a0   : > { %v4593_v1 = vunpack.i.h.bf16 %v4591_v8  ;;  %v4592_v40 = vunpack.i.l.bf16 %v4591_v8  ;;  %v4588_v9 = vunpack.i.h.bf16 %v4586_v63  ;;  %v4587_v39 = vunpack.i.l.bf16 %v4586_v63  ;;  %4033 = vmatpush3.bf16.msk.msra.mxu0 %vm5275_vm12, %v3770_v20  ;;  %4072 = vmatprep.subr.msk.bf16.mxu1 %vm5211_vm13, %v3846_v18 }
 0x8a1   : > { %4073 = vmatpush3.bf16.msra.mxu1 %v2971_v37  ;;  %v3354_v37 = vpack.c.bf16 %v4742_v14, %v4743_v58 }
 0x8a2   : > { %v3849_v60 = vpack.c.bf16 %v4588_v9, %v4587_v39  ;;  %4300 = vmatprep.subr.bf16.mxu1 %v3355_v19  ;;  %v3852_v33 = vpack.c.bf16 %v4593_v1, %v4592_v40 }
 0x8a3   : > { %v4596_v34 = vpop.permute.xlu1 %4595  ;;  %3184 = vmatmul.mubr.bf16.vlgmr.msra.gmra.mxu0 %v4620_v32  ;;  %v4601_v35 = vpop.permute.xlu0 %4600 }
 0x8a4   : > { %v4598_v36 = vunpack.i.h.bf16 %v4596_v34  ;;  %v4597_v2 = vunpack.i.l.bf16 %v4596_v34  ;;  %4284 = vmatprep.subr.msk.bf16.mxu0 %vm5177_vm5, %v3849_v60  ;;  %3249 = vmatmul.mubr.bf16.vlgmr.msra.gmra.mxu1 %v4623_v44  ;;  %v4603_v0 = vunpack.i.h.bf16 %v4601_v35  ;;  %v4602_v21 = vunpack.i.l.bf16 %v4601_v35 }
 0x8a5   : > { %4285 = vmatpush3.bf16.msk.msra.mxu0 %vm5177_vm5, %v3849_v60  ;;  %3191 = vmatprep.mubr.bf16.mxu0 %v4626_v26 }
 0x8a6   : > { %4286 = vmatprep.subr.msk.bf16.mxu0 %vm5177_vm5, %v3852_v33  ;;  %3256 = vmatprep.mubr.bf16.mxu1 %v4629_v27  ;;  %v3855_v38 = vpack.c.bf16 %v4598_v36, %v4597_v2  ;;  %v3858_v48 = vpack.c.bf16 %v4603_v0, %v4602_v21 }
 0x8a7   : > { %4301 = vmatpush3.bf16.msra.mxu1 %v3355_v19 }
 0x8a8   : > { %4302 = vmatprep.subr.bf16.mxu1 %v3354_v37 }
 0x8a9   : > { %4287 = vmatpush3.bf16.msk.msra.mxu0 %vm5177_vm5, %v3852_v33 }
 0x8aa   : > { %4288 = vmatprep.subr.msk.bf16.mxu0 %vm5177_vm5, %v3855_v38 }
 0x8ab   : > { %3192 = vmatmul.mubr.bf16.gmra.mxu0 %v4628_v30  ;;  %4303 = vmatpush3.bf16.msra.mxu1 %v3354_v37 }
 0x8ac   : > { %3257 = vmatmul.mubr.bf16.gmra.mxu1 %v4631_v45  ;;  %3199 = vmatprep.mubr.bf16.mxu0 %v4632_v46 }
 0x8ad   : > { %4289 = vmatpush3.bf16.msk.msra.mxu0 %vm5177_vm5, %v3855_v38  ;;  %3264 = vmatprep.mubr.bf16.mxu1 %v4635_v47 }
 0x8ae   : > { %4290 = vmatprep.subr.msk.bf16.mxu0 %vm5177_vm5, %v3858_v48 }
 0x8b0   : > { %v3002_v61 = vpop.permute.xlu1 %3001  ;;  %v3007_v56 = vpop.permute.xlu0 %3006 }
 0x8b1   : > { %4291 = vmatpush3.bf16.msk.msra.mxu0 %vm5177_vm5, %v3858_v48 }
 0x8b3   : > { %3200 = vmatmul.mubr.bf16.gmra.mxu0 %v4634_v62 }
 0x8b4   : > { %3265 = vmatmul.mubr.bf16.gmra.mxu1 %v4637_v13  ;;  %3207 = vmatprep.mubr.bf16.mxu0 %v4638_v49  ;;  %v3012_v8 = vpop.permute.xlu1 %3011  ;;  %v3017_v26 = vpop.permute.xlu0 %3016 }
 0x8b5   : > { %3272 = vmatprep.mubr.bf16.mxu1 %v4641_v5 }
 0x8b8   : > { %v3022_v27 = vpop.permute.xlu1 %3021  ;;  %v3027_v48 = vpop.permute.xlu0 %3026 }
 0x8bb   : > { %3208 = vmatmul.mubr.bf16.gmra.mxu0 %v4640_v50 }
 0x8bc   : > { %3273 = vmatmul.mubr.bf16.gmra.mxu1 %v4643_v54  ;;  %4292 = vmatprep.mubr.msk.bf16.mxu0 %vm608_vm0, %v4644_v52  ;;  %v3032_v49 = vpop.permute.xlu1 %3031 }
 0x8bd   : > { %4304 = vmatprep.mubr.msk.bf16.mxu1 %vm637_vm1, %v4646_v4 }
 0x8c3   : > { %4293 = vmatmul.mubr.msk.bf16.vlgmr.msra.gmra.mxu0 %vm608_vm0, %v4645_v7 }
 0x8c4   : > { %4305 = vmatmul.mubr.msk.bf16.vlgmr.msra.gmra.mxu1 %vm637_vm1, %v4647_v55  ;;  %4296 = vmatprep.mubr.msk.bf16.mxu0 %vm608_vm0, %v4648_v22 }
 0x8c5   : > { %4308 = vmatprep.mubr.msk.bf16.mxu1 %vm637_vm1, %v4650_v16 }
 0x8cb   : > { %4297 = vmatmul.mubr.msk.bf16.gmra.mxu0 %vm608_vm0, %v4649_v23 }
 0x8cc   : > { %4309 = vmatmul.mubr.msk.bf16.gmra.mxu1 %vm637_vm1, %v4651_v17 }
 0x963   : > { %v4034_v42 = vpop.f32.mrf.mxu0 }
 0x964   : > { %v4074_v51 = vpop.f32.mrf.mxu1 }
 0x965   : > { %v4035_v53 = vpop.f32.mrf.mxu0 }
 0x966   : > { %v4075_v31 = vpop.f32.mrf.mxu1  ;;  %v4036_v39 = vadd.f32 %v4035_v53, %v4034_v42 }
 0x967   : > { %v4037_v10 = vpop.f32.mrf.mxu0  ;;  %v4076_v37 = vadd.f32 %v4075_v31, %v4074_v51 }
 0x968   : > { %v4077_v6 = vpop.f32.mrf.mxu1  ;;  %v3186_v58 = vadd.f32 %v4036_v39, %v3002_v61 }
 0x969   : > { %v4038_v59 = vpop.f32.mrf.mxu0 }
 0x96a   : > { %v4078_v11 = vpop.f32.mrf.mxu1  ;;  %v4039_v35 = vadd.f32 %v4038_v59, %v4037_v10  ;;  %v3251_v52 = vadd.f32 %v4076_v37, %v3186_v58 }
 0x96b   : > { %v4040_v12 = vpop.f32.mrf.mxu0  ;;  %v4079_v50 = vadd.f32 %v4078_v11, %v4077_v6 }
 0x96c   : > { %v4080_v29 = vpop.f32.mrf.mxu1  ;;  %v3189_v5 = vadd.f32 %v4039_v35, %v3007_v56 }
 0x96d   : > { %v4041_v3 = vpop.f32.mrf.mxu0 }
 0x96e   : > { %v4081_v15 = vpop.f32.mrf.mxu1  ;;  %v4042_v1 = vadd.f32 %v4041_v3, %v4040_v12  ;;  %v3254_v12 = vadd.f32 %v4079_v50, %v3189_v5  ;;  %v3037_v3 = vpop.permute.xlu0 %3036 }
 0x96f   : > { %v4043_v43 = vpop.f32.mrf.mxu0  ;;  %v4082_v33 = vadd.f32 %v4081_v15, %v4080_v29 }
 0x970   : > { %v4083_v28 = vpop.f32.mrf.mxu1  ;;  %v3194_v34 = vadd.f32 %v4042_v1, %v3012_v8 }
 0x971   : > { %v4044_v24 = vpop.f32.mrf.mxu0 }
 0x972   : > { %v4084_v25 = vpop.f32.mrf.mxu1  ;;  %v4045_v36 = vadd.f32 %v4044_v24, %v4043_v43  ;;  %v3259_v47 = vadd.f32 %v4082_v33, %v3194_v34 }
 0x973   : > { %v4046_v41 = vpop.f32.mrf.mxu0  ;;  %v4085_v45 = vadd.f32 %v4084_v25, %v4083_v28 }
 0x974   : > { %v4086_v18 = vpop.f32.mrf.mxu1  ;;  %v3197_v38 = vadd.f32 %v4045_v36, %v3017_v26 }
 0x975   : > { %v4047_v20 = vpop.f32.mrf.mxu0 }
 0x976   : > { %v4087_v57 = vpop.f32.mrf.mxu1  ;;  %v4048_v62 = vadd.f32 %v4047_v20, %v4046_v41  ;;  %v3262_v42 = vadd.f32 %v4085_v45, %v3197_v38 }
 0x977   : > { %v4049_v19 = vpop.f32.mrf.mxu0  ;;  %v4088_v31 = vadd.f32 %v4087_v57, %v4086_v18 }
 0x978   : > { %v5835_v63 = vpop.f32.mrf.mxu1  ;;  %v3202_v53 = vadd.f32 %v4048_v62, %v3022_v27 }
 0x979   : > { %v4050_v32 = vpop.f32.mrf.mxu0 }
 0x97a   : > { %v5837_v40 = vpop.f32.mrf.mxu1  ;;  %v4051_v59 = vadd.f32 %v4050_v32, %v4049_v19  ;;  %v3267_v20 = vadd.f32 %v4088_v31, %v3202_v53 }
 0x97b   : > { %v4052_v9 = vpop.f32.mrf.mxu0  ;;  %v4091_v56 = vadd.f32 %v5837_v40, %v5835_v63 }
 0x97c   : > { %v4092_v44 = vpop.f32.mrf.mxu1  ;;  %v3205_v57 = vadd.f32 %v4051_v59, %v3027_v48 }
 0x97d   : > { %v4053_v60 = vpop.f32.mrf.mxu0 }
 0x97e   : > { %v4093_v2 = vpop.f32.mrf.mxu1  ;;  %v4054_v0 = vadd.f32 %v4053_v60, %v4052_v9  ;;  %v3270_v27 = vadd.f32 %v4091_v56, %v3205_v57 }
 0x97f   : > { %v4055_v14 = vpop.f32.mrf.mxu0  ;;  %v4094_v55 = vadd.f32 %v4093_v2, %v4092_v44 }
 0x980   : > { %v4095_v30 = vpop.f32.mrf.mxu1  ;;  %v3210_v7 = vadd.f32 %v4054_v0, %v3032_v49 }
 0x981   : > { %v4056_v21 = vpop.f32.mrf.mxu0 }
 0x982   : > { %v4096_v46 = vpop.f32.mrf.mxu1  ;;  %v4057_v16 = vadd.f32 %v4056_v21, %v4055_v14  ;;  %v3275_v43 = vadd.f32 %v4094_v55, %v3210_v7 }
 0x983   : > { %v4294_v13 = vpop.f32.mrf.mxu0  ;;  %v4097_v24 = vadd.f32 %v4096_v46, %v4095_v30 }
 0x984   : > { %v3324_v54 = vadd.f32 %v4294_v13, %v3259_v47  ;;  %v4306_v4 = vpop.f32.mrf.mxu1  ;;  %v3213_v28 = vadd.f32 %v4057_v16, %v3037_v3 }
 0x985   : > { %v3315_v22 = vpop.f32.mrf.mxu0 }
 0x986   : > { %v3316_v23 = vadd.f32 %v3315_v22, %v3251_v52  ;;  %v3455_v17 = vadd.f32 %v4306_v4, %v3324_v54  ;;  %v3422_v51 = vpop.f32.mrf.mxu1  ;;  %v3278_v44 = vadd.f32 %v4097_v24, %v3213_v28 }
 0x987   : > { %v4295_v10 = vpop.f32.mrf.mxu0 }
 0x988   : > { %3463 = vst.msk [vmem:[%s5842_s26 + $0x10] sm:$0xff] %vm608_vm0, %v3455_v17  ;;  %v3327_v6 = vadd.f32 %v4295_v10, %v3262_v42  ;;  %v3453_v11 = vadd.f32 %v3422_v51, %v3316_v23  ;;  %v4307_v29 = vpop.f32.mrf.mxu1 }
 0x989   : > { %v3318_v15 = vpop.f32.mrf.mxu0 }
 0x98a   : > { %3461 = vst.msk [vmem:[%s5842_s26] sm:$0xff] %vm608_vm0, %v3453_v11  ;;  %v3319_v61 = vadd.f32 %v3318_v15, %v3254_v12  ;;  %v3456_v25 = vadd.f32 %v4307_v29, %v3327_v6  ;;  %v3425_v41 = vpop.f32.mrf.mxu1 }
 0x98b   : > { %v4298_v18 = vpop.f32.mrf.mxu0 }
 0x98c   : > { %3464 = vst.msk [vmem:[%s5842_s26 + $0x18] sm:$0xff] %vm608_vm0, %v3456_v25  ;;  %v3340_v19 = vadd.f32 %v4298_v18, %v3275_v43  ;;  %v3454_v8 = vadd.f32 %v3425_v41, %v3319_v61  ;;  %v4310_v32 = vpop.f32.mrf.mxu1 }
 0x98d   : > { %v3331_v1 = vpop.f32.mrf.mxu0 }
 0x98e   : > { %3462 = vst.msk [vmem:[%s5842_s26 + $0x8] sm:$0xff] %vm608_vm0, %v3454_v8  ;;  %v3332_v9 = vadd.f32 %v3331_v1, %v3267_v20  ;;  %v3459_v39 = vadd.f32 %v4310_v32, %v3340_v19  ;;  %v3438_v26 = vpop.f32.mrf.mxu1 }
 0x98f   : > { %v4299_v60 = vpop.f32.mrf.mxu0 }
 0x990   : > { %3467 = vst.msk [vmem:[%s5842_s26 + $0x30] sm:$0xff] %vm608_vm0, %v3459_v39  ;;  %v3343_v63 = vadd.f32 %v4299_v60, %v3278_v44  ;;  %v3457_v40 = vadd.f32 %v3438_v26, %v3332_v9  ;;  %v4311_v34 = vpop.f32.mrf.mxu1 }
 0x991   : > { %v3334_v33 = vpop.f32.mrf.mxu0 }
 0x992   : > { %3465 = vst.msk [vmem:[%s5842_s26 + $0x20] sm:$0xff] %vm608_vm0, %v3457_v40  ;;  %v3335_v36 = vadd.f32 %v3334_v33, %v3270_v27  ;;  %v3460_v2 = vadd.f32 %v4311_v34, %v3343_v63  ;;  %v3441_v14 = vpop.f32.mrf.mxu1 }
 0x994   : > { %3468 = vst.msk [vmem:[%s5842_s26 + $0x38] sm:$0xff] %vm608_vm0, %v3460_v2  ;;  %v3458_v58 = vadd.f32 %v3441_v14, %v3335_v36 }
 0x996   : > { %3466 = vst.msk [vmem:[%s5842_s26 + $0x28] sm:$0xff] %vm608_vm0, %v3458_v58 }
 0x997   : > { %4757 = shalt.err (!%p4754_p3)
}
 0x998   : > { %s4758_s2 = scalar_lea.hbm %s5863_s5, 1024  ;;  %s4762_s18 = scalar_lea.hbm %s5931_s17, 2048 }
 0x999   : > { %p4759_p4 = scmp.ne.s32.totalorder %s5863_s5, %s4758_s2  ;;  %p4763_p9 = scmp.lt.s32.totalorder %s5863_s5, %s5931_s17 }
 0x99a   : > { %p4764_p10 = scmp.lt.s32.totalorder %s4762_s18, %s4758_s2 }
 0x99b   : > { %p4760_p7 = pnand %p4759_p4, %p4946_p5 }
 0x99c   : > { %p4765_p11 = por %p4764_p10, %p4763_p9 }
 0x99d   : > { %p4761_p8 = pneg %p4760_p7 }
 0x99f   : > { %p4766_p12 = pnand %p4765_p11, %p4761_p8 }
 0x9a1   : > { %4769 = shalt.err (!%p4766_p12)
}
 0x9a2   : > { %s4817_s21 = smov 128  }
 0x9a3   : > { %4312 = dma.vmem_to_hbm [thread:$0]  (%p4946_p5), %s5867_s22, 1024, %s5863_s5, %s5873_s28, %s4817_s21, %s4817_s21, %s5987_s23  }
 0x9a4 PF: > { %p4318_p13 = scmp.ge.s32.totalorder %s4804_s27, 2  ;;  %s3498_s30 = sand.u32 1, %s4792_s24  }
 0x9a5   : > { %s3499_s19 = scalar_lea.sflag [#allocation3], %s3498_s30 }
 0x9a6   : > { %p4315_p0 = pnand %p4318_p13, %p4950_p6 }
 0x9a8   : > { %p4316_p1 = pneg %p4315_p0 }
 0x9aa   : > { %4787 = dma.done.wait (%p4316_p1), %s3499_s19, 1024  }
 0x9ab   : > { %4789 = vsyncadd (%p4316_p1), %s3499_s19, 4294966272  ;;  %s5994_s27 = sld [smem:[#allocation6_spill]]  ;;  %s5997_s24 = smov %s4796_s25 }
 0x9ac   : > { %s5995_s1 = sld [smem:[#allocation5_spill]] }
 0x9ad   : > { %s5996_s26 = sld [smem:[#allocation7_spill]] }
 0x9b1   : > { %p27_p2 = scmp.ge.s32.totalorder %s5994_s27, 4  }
 0x9b2   : > { %s5998_s25 = smov %s5995_s1 }
 0x9b3   :  { %29 = sbr.rel (!%p27_p2) target bundleno = 10 (0xa), region = 126 }
 0x9b8   :  { %3504 = vsyncpa [#allocation3], 1 }
 0x9b9   :  { %3506 = vsyncpa [#allocation3 + $0x1], 1 }

</bundles_post_ra>
